<compile_context>
chip_gen: v7x
topology: tpu7x:2x2x1
jax: 0.10.0
libtpu: 0.0.40
codegen_flags: <defaults>
</compile_context>

<pallas_src>
import numpy as np
import jax
import jax.numpy as jnp
from jax.experimental import pallas as pl
from jax.experimental.pallas import tpu as pltpu

SEQ_LEN = 8
N_FEATURES = 4
HIDDEN = 32
NUM_LAYERS = 3


def lstm_encoder_kernel(x_ref,
                        wih0_ref, whh0_ref, b0_ref,
                        wih1_ref, whh1_ref, b1_ref,
                        wih2_ref, whh2_ref, b2_ref,
                        h_out_ref, c_out_ref):
    """3-layer LSTM over the full sequence (batch = 1), fully unrolled.

    Each layer:
      gates_in = X_layer @ W_ih + (b_ih + b_hh)     -- one batched matmul
      per step: gates = gates_in[t] + h @ W_hh      -- single matmul on the
                                                       serial h->h path
    The per-layer hidden sequence lives entirely in registers and feeds the
    next layer's batched input projection directly.
    """
    H = HIDDEN
    T = SEQ_LEN

    def run_layer(x_seq, wih_ref, whh_ref, b_ref):
        # Hoisted input projection + bias: (T, in_dim) @ (in_dim, 4H).
        gates_in = (jnp.dot(x_seq, wih_ref[...],
                            preferred_element_type=jnp.float32)
                    + b_ref[...])                              # (T, 4H)
        w_hh = whh_ref[...]                                    # (H, 4H)

        h = jnp.zeros((1, H), jnp.float32)
        c = jnp.zeros((1, H), jnp.float32)
        outs = []
        # T is static and small: fully unroll so the scheduler can overlap
        # MXU pop, EUP activations and VPU combines across steps.
        for t in range(T):
            gates = gates_in[t:t + 1, :] + jnp.dot(
                h, w_hh, preferred_element_type=jnp.float32)   # (1, 4H)
            # Whole-vreg activations; slice gates from the activated results.
            sig = jax.nn.sigmoid(gates)
            tg = jnp.tanh(gates)
            i_g = sig[:, 0 * H:1 * H]
            f_g = sig[:, 1 * H:2 * H]
            g_g = tg[:, 2 * H:3 * H]
            o_g = sig[:, 3 * H:4 * H]
            c = f_g * c + i_g * g_g
            h = o_g * jnp.tanh(c)
            outs.append(h)
        return jnp.concatenate(outs, axis=0), h, c             # (T, H), finals

    seq0, h0, c0 = run_layer(x_ref[...], wih0_ref, whh0_ref, b0_ref)
    seq1, h1, c1 = run_layer(seq0, wih1_ref, whh1_ref, b1_ref)
    _, h2, c2 = run_layer(seq1, wih2_ref, whh2_ref, b2_ref)

    # Single stacked store of the per-layer finals.
    h_out_ref[...] = jnp.concatenate([h0, h1, h2], axis=0)
    c_out_ref[...] = jnp.concatenate([c0, c1, c2], axis=0)


def init_params(key):
    """Deterministic PyTorch-style LSTM init: U(-1/sqrt(H), 1/sqrt(H))."""
    k = 1.0 / np.sqrt(HIDDEN)
    params = []
    for layer in range(NUM_LAYERS):
        in_dim = N_FEATURES if layer == 0 else HIDDEN
        key, k1, k2, k3, k4 = jax.random.split(key, 5)
        w_ih = jax.random.uniform(k1, (4 * HIDDEN, in_dim), jnp.float32, -k, k)
        w_hh = jax.random.uniform(k2, (4 * HIDDEN, HIDDEN), jnp.float32, -k, k)
        b_ih = jax.random.uniform(k3, (4 * HIDDEN,), jnp.float32, -k, k)
        b_hh = jax.random.uniform(k4, (4 * HIDDEN,), jnp.float32, -k, k)
        # pre-transpose so the kernel does x @ W; fold both biases together
        params.append((jnp.transpose(w_ih),                     # (in_dim, 4H)
                       jnp.transpose(w_hh),                     # (H, 4H)
                       (b_ih + b_hh).reshape(1, 4 * HIDDEN)))   # (1, 4H)
    return params


def encoder_forward(x, params):
    """Pallas equivalent of Encoder.forward: returns (hidden, cell),
    each (num_layers, 1, hidden_dim)."""
    x = jnp.asarray(x, jnp.float32).reshape(SEQ_LEN, N_FEATURES)
    flat = []
    for (wih, whh, b) in params:
        flat += [wih, whh, b]

    vmem = pl.BlockSpec(memory_space=pltpu.MemorySpace.VMEM)
    h, c = pl.pallas_call(
        lstm_encoder_kernel,
        out_shape=(jax.ShapeDtypeStruct((NUM_LAYERS, HIDDEN), jnp.float32),
                   jax.ShapeDtypeStruct((NUM_LAYERS, HIDDEN), jnp.float32)),
        in_specs=[vmem] * (1 + 3 * NUM_LAYERS),
        out_specs=(vmem, vmem),
    )(x, *flat)
    return h.reshape(NUM_LAYERS, 1, HIDDEN), c.reshape(NUM_LAYERS, 1, HIDDEN)


def reference_forward(x, params):
    """Pure-JAX reference of the same eval-mode LSTM stack (for sanity check)."""
    inp = jnp.asarray(x, jnp.float32).reshape(SEQ_LEN, N_FEATURES)
    hs, cs = [], []
    for (wih, whh, b) in params:
        h = jnp.zeros((1, HIDDEN), jnp.float32)
        c = jnp.zeros((1, HIDDEN), jnp.float32)
        outs = []
        for t in range(SEQ_LEN):
            x_t = inp[t:t + 1]
            gates = x_t @ wih + h @ whh + b
            i = jax.nn.sigmoid(gates[:, :HIDDEN])
            f = jax.nn.sigmoid(gates[:, HIDDEN:2 * HIDDEN])
            g = jnp.tanh(gates[:, 2 * HIDDEN:3 * HIDDEN])
            o = jax.nn.sigmoid(gates[:, 3 * HIDDEN:])
            c = f * c + i * g
            h = o * jnp.tanh(c)
            outs.append(h)
        inp = jnp.concatenate(outs, axis=0)
        hs.append(h)
        cs.append(c)
    return jnp.stack(hs), jnp.stack(cs)


if __name__ == "__main__":
    key = jax.random.PRNGKey(0)
    key, pkey, xkey = jax.random.split(key, 3)
    params = init_params(pkey)
    # matches the torch forward's x.reshape((1, seq_len, n_features))
    x = jax.random.normal(xkey, (1, SEQ_LEN, N_FEATURES), jnp.float32)

    hidden, cell = encoder_forward(x, params)
    hidden = jax.block_until_ready(hidden)
    cell = jax.block_until_ready(cell)

    h_ref, c_ref = reference_forward(x, params)
    assert hidden.shape == (NUM_LAYERS, 1, HIDDEN)
    assert cell.shape == (NUM_LAYERS, 1, HIDDEN)
    np.testing.assert_allclose(np.asarray(hidden), np.asarray(h_ref),
                               rtol=1e-5, atol=1e-5)
    np.testing.assert_allclose(np.asarray(cell), np.asarray(c_ref),
                               rtol=1e-5, atol=1e-5)
    print("KERNEL_OK")
</pallas_src>

<mosaic_0001>
module attributes {stable_mosaic.version = 11 : i64} {
  func.func @lstm_encoder_kernel(%arg0: memref<8x4xf32, #tpu.memory_space<vmem>>, %arg1: memref<4x128xf32, #tpu.memory_space<vmem>>, %arg2: memref<32x128xf32, #tpu.memory_space<vmem>>, %arg3: memref<1x128xf32, #tpu.memory_space<vmem>>, %arg4: memref<32x128xf32, #tpu.memory_space<vmem>>, %arg5: memref<32x128xf32, #tpu.memory_space<vmem>>, %arg6: memref<1x128xf32, #tpu.memory_space<vmem>>, %arg7: memref<32x128xf32, #tpu.memory_space<vmem>>, %arg8: memref<32x128xf32, #tpu.memory_space<vmem>>, %arg9: memref<1x128xf32, #tpu.memory_space<vmem>>, %arg10: memref<3x32xf32, #tpu.memory_space<vmem>>, %arg11: memref<3x32xf32, #tpu.memory_space<vmem>>) attributes {dimension_semantics = [], scalar_prefetch = 0 : i64, scratch_operands = 0 : i64, tpu.core_type = #tpu.core_type<tc>} {
    %c0 = arith.constant 0 : index
    %c0_0 = arith.constant 0 : index
    %0 = vector.load %arg0[%c0, %c0_0] : memref<8x4xf32, #tpu.memory_space<vmem>>, vector<8x4xf32>
    %c0_1 = arith.constant 0 : index
    %c0_2 = arith.constant 0 : index
    %1 = vector.load %arg1[%c0_1, %c0_2] : memref<4x128xf32, #tpu.memory_space<vmem>>, vector<4x128xf32>
    %cst = arith.constant dense<0.000000e+00> : vector<8x128xf32>
    %2 = tpu.matmul %0, %1, %cst {dimension_numbers = #tpu.dot_dimension_numbers<[1], [0], [0], [1], [0, 0, 1, 1], [], []>} : vector<8x4xf32>, vector<4x128xf32>, vector<8x128xf32> -> vector<8x128xf32>
    %c0_3 = arith.constant 0 : index
    %c0_4 = arith.constant 0 : index
    %3 = vector.load %arg3[%c0_3, %c0_4] : memref<1x128xf32, #tpu.memory_space<vmem>>, vector<1x128xf32>
    %4 = vector.broadcast %3 : vector<1x128xf32> to vector<8x128xf32>
    %5 = arith.addf %2, %4 : vector<8x128xf32>
    %c0_5 = arith.constant 0 : index
    %c0_6 = arith.constant 0 : index
    %6 = vector.load %arg2[%c0_5, %c0_6] : memref<32x128xf32, #tpu.memory_space<vmem>>, vector<32x128xf32>
    %cst_7 = arith.constant 0.000000e+00 : f32
    %7 = vector.broadcast %cst_7 : f32 to vector<1x32xf32>
    %cst_8 = arith.constant 0.000000e+00 : f32
    %8 = vector.broadcast %cst_8 : f32 to vector<1x32xf32>
    %9 = vector.extract_strided_slice %5 {offsets = [0, 0], sizes = [1, 128], strides = [1, 1]} : vector<8x128xf32> to vector<1x128xf32>
    %cst_9 = arith.constant dense<0.000000e+00> : vector<1x128xf32>
    %10 = tpu.matmul %7, %6, %cst_9 {dimension_numbers = #tpu.dot_dimension_numbers<[1], [0], [0], [1], [0, 0, 1, 1], [], []>} : vector<1x32xf32>, vector<32x128xf32>, vector<1x128xf32> -> vector<1x128xf32>
    %11 = arith.addf %9, %10 : vector<1x128xf32>
    %12 = arith.negf %11 : vector<1x128xf32>
    %13 = math.exp %12 : vector<1x128xf32>
    %cst_10 = arith.constant 1.000000e+00 : f32
    %14 = vector.broadcast %cst_10 : f32 to vector<1x128xf32>
    %15 = arith.addf %14, %13 : vector<1x128xf32>
    %16 = arith.divf %14, %15 : vector<1x128xf32>
    %17 = math.tanh %11 : vector<1x128xf32>
    %18 = vector.extract_strided_slice %16 {offsets = [0, 0], sizes = [1, 32], strides = [1, 1]} : vector<1x128xf32> to vector<1x32xf32>
    %19 = vector.extract_strided_slice %16 {offsets = [0, 32], sizes = [1, 32], strides = [1, 1]} : vector<1x128xf32> to vector<1x32xf32>
    %20 = vector.extract_strided_slice %17 {offsets = [0, 64], sizes = [1, 32], strides = [1, 1]} : vector<1x128xf32> to vector<1x32xf32>
    %21 = vector.extract_strided_slice %16 {offsets = [0, 96], sizes = [1, 32], strides = [1, 1]} : vector<1x128xf32> to vector<1x32xf32>
    %22 = arith.mulf %19, %8 : vector<1x32xf32>
    %23 = arith.mulf %18, %20 : vector<1x32xf32>
    %24 = arith.addf %22, %23 : vector<1x32xf32>
    %25 = math.tanh %24 : vector<1x32xf32>
    %26 = arith.mulf %21, %25 : vector<1x32xf32>
    %27 = vector.extract_strided_slice %5 {offsets = [1, 0], sizes = [1, 128], strides = [1, 1]} : vector<8x128xf32> to vector<1x128xf32>
    %cst_11 = arith.constant dense<0.000000e+00> : vector<1x128xf32>
    %28 = tpu.matmul %26, %6, %cst_11 {dimension_numbers = #tpu.dot_dimension_numbers<[1], [0], [0], [1], [0, 0, 1, 1], [], []>} : vector<1x32xf32>, vector<32x128xf32>, vector<1x128xf32> -> vector<1x128xf32>
    %29 = arith.addf %27, %28 : vector<1x128xf32>
    %30 = arith.negf %29 : vector<1x128xf32>
    %31 = math.exp %30 : vector<1x128xf32>
    %cst_12 = arith.constant 1.000000e+00 : f32
    %32 = vector.broadcast %cst_12 : f32 to vector<1x128xf32>
    %33 = arith.addf %32, %31 : vector<1x128xf32>
    %34 = arith.divf %32, %33 : vector<1x128xf32>
    %35 = math.tanh %29 : vector<1x128xf32>
    %36 = vector.extract_strided_slice %34 {offsets = [0, 0], sizes = [1, 32], strides = [1, 1]} : vector<1x128xf32> to vector<1x32xf32>
    %37 = vector.extract_strided_slice %34 {offsets = [0, 32], sizes = [1, 32], strides = [1, 1]} : vector<1x128xf32> to vector<1x32xf32>
    %38 = vector.extract_strided_slice %35 {offsets = [0, 64], sizes = [1, 32], strides = [1, 1]} : vector<1x128xf32> to vector<1x32xf32>
    %39 = vector.extract_strided_slice %34 {offsets = [0, 96], sizes = [1, 32], strides = [1, 1]} : vector<1x128xf32> to vector<1x32xf32>
    %40 = arith.mulf %37, %24 : vector<1x32xf32>
    %41 = arith.mulf %36, %38 : vector<1x32xf32>
    %42 = arith.addf %40, %41 : vector<1x32xf32>
    %43 = math.tanh %42 : vector<1x32xf32>
    %44 = arith.mulf %39, %43 : vector<1x32xf32>
    %45 = vector.extract_strided_slice %5 {offsets = [2, 0], sizes = [1, 128], strides = [1, 1]} : vector<8x128xf32> to vector<1x128xf32>
    %cst_13 = arith.constant dense<0.000000e+00> : vector<1x128xf32>
    %46 = tpu.matmul %44, %6, %cst_13 {dimension_numbers = #tpu.dot_dimension_numbers<[1], [0], [0], [1], [0, 0, 1, 1], [], []>} : vector<1x32xf32>, vector<32x128xf32>, vector<1x128xf32> -> vector<1x128xf32>
    %47 = arith.addf %45, %46 : vector<1x128xf32>
    %48 = arith.negf %47 : vector<1x128xf32>
    %49 = math.exp %48 : vector<1x128xf32>
    %cst_14 = arith.constant 1.000000e+00 : f32
    %50 = vector.broadcast %cst_14 : f32 to vector<1x128xf32>
    %51 = arith.addf %50, %49 : vector<1x128xf32>
    %52 = arith.divf %50, %51 : vector<1x128xf32>
    %53 = math.tanh %47 : vector<1x128xf32>
    %54 = vector.extract_strided_slice %52 {offsets = [0, 0], sizes = [1, 32], strides = [1, 1]} : vector<1x128xf32> to vector<1x32xf32>
    %55 = vector.extract_strided_slice %52 {offsets = [0, 32], sizes = [1, 32], strides = [1, 1]} : vector<1x128xf32> to vector<1x32xf32>
    %56 = vector.extract_strided_slice %53 {offsets = [0, 64], sizes = [1, 32], strides = [1, 1]} : vector<1x128xf32> to vector<1x32xf32>
    %57 = vector.extract_strided_slice %52 {offsets = [0, 96], sizes = [1, 32], strides = [1, 1]} : vector<1x128xf32> to vector<1x32xf32>
    %58 = arith.mulf %55, %42 : vector<1x32xf32>
    %59 = arith.mulf %54, %56 : vector<1x32xf32>
    %60 = arith.addf %58, %59 : vector<1x32xf32>
    %61 = math.tanh %60 : vector<1x32xf32>
    %62 = arith.mulf %57, %61 : vector<1x32xf32>
    %63 = vector.extract_strided_slice %5 {offsets = [3, 0], sizes = [1, 128], strides = [1, 1]} : vector<8x128xf32> to vector<1x128xf32>
    %cst_15 = arith.constant dense<0.000000e+00> : vector<1x128xf32>
    %64 = tpu.matmul %62, %6, %cst_15 {dimension_numbers = #tpu.dot_dimension_numbers<[1], [0], [0], [1], [0, 0, 1, 1], [], []>} : vector<1x32xf32>, vector<32x128xf32>, vector<1x128xf32> -> vector<1x128xf32>
    %65 = arith.addf %63, %64 : vector<1x128xf32>
    %66 = arith.negf %65 : vector<1x128xf32>
    %67 = math.exp %66 : vector<1x128xf32>
    %cst_16 = arith.constant 1.000000e+00 : f32
    %68 = vector.broadcast %cst_16 : f32 to vector<1x128xf32>
    %69 = arith.addf %68, %67 : vector<1x128xf32>
    %70 = arith.divf %68, %69 : vector<1x128xf32>
    %71 = math.tanh %65 : vector<1x128xf32>
    %72 = vector.extract_strided_slice %70 {offsets = [0, 0], sizes = [1, 32], strides = [1, 1]} : vector<1x128xf32> to vector<1x32xf32>
    %73 = vector.extract_strided_slice %70 {offsets = [0, 32], sizes = [1, 32], strides = [1, 1]} : vector<1x128xf32> to vector<1x32xf32>
    %74 = vector.extract_strided_slice %71 {offsets = [0, 64], sizes = [1, 32], strides = [1, 1]} : vector<1x128xf32> to vector<1x32xf32>
    %75 = vector.extract_strided_slice %70 {offsets = [0, 96], sizes = [1, 32], strides = [1, 1]} : vector<1x128xf32> to vector<1x32xf32>
    %76 = arith.mulf %73, %60 : vector<1x32xf32>
    %77 = arith.mulf %72, %74 : vector<1x32xf32>
    %78 = arith.addf %76, %77 : vector<1x32xf32>
    %79 = math.tanh %78 : vector<1x32xf32>
    %80 = arith.mulf %75, %79 : vector<1x32xf32>
    %81 = vector.extract_strided_slice %5 {offsets = [4, 0], sizes = [1, 128], strides = [1, 1]} : vector<8x128xf32> to vector<1x128xf32>
    %cst_17 = arith.constant dense<0.000000e+00> : vector<1x128xf32>
    %82 = tpu.matmul %80, %6, %cst_17 {dimension_numbers = #tpu.dot_dimension_numbers<[1], [0], [0], [1], [0, 0, 1, 1], [], []>} : vector<1x32xf32>, vector<32x128xf32>, vector<1x128xf32> -> vector<1x128xf32>
    %83 = arith.addf %81, %82 : vector<1x128xf32>
    %84 = arith.negf %83 : vector<1x128xf32>
    %85 = math.exp %84 : vector<1x128xf32>
    %cst_18 = arith.constant 1.000000e+00 : f32
    %86 = vector.broadcast %cst_18 : f32 to vector<1x128xf32>
    %87 = arith.addf %86, %85 : vector<1x128xf32>
    %88 = arith.divf %86, %87 : vector<1x128xf32>
    %89 = math.tanh %83 : vector<1x128xf32>
    %90 = vector.extract_strided_slice %88 {offsets = [0, 0], sizes = [1, 32], strides = [1, 1]} : vector<1x128xf32> to vector<1x32xf32>
    %91 = vector.extract_strided_slice %88 {offsets = [0, 32], sizes = [1, 32], strides = [1, 1]} : vector<1x128xf32> to vector<1x32xf32>
    %92 = vector.extract_strided_slice %89 {offsets = [0, 64], sizes = [1, 32], strides = [1, 1]} : vector<1x128xf32> to vector<1x32xf32>
    %93 = vector.extract_strided_slice %88 {offsets = [0, 96], sizes = [1, 32], strides = [1, 1]} : vector<1x128xf32> to vector<1x32xf32>
    %94 = arith.mulf %91, %78 : vector<1x32xf32>
    %95 = arith.mulf %90, %92 : vector<1x32xf32>
    %96 = arith.addf %94, %95 : vector<1x32xf32>
    %97 = math.tanh %96 : vector<1x32xf32>
    %98 = arith.mulf %93, %97 : vector<1x32xf32>
    %99 = vector.extract_strided_slice %5 {offsets = [5, 0], sizes = [1, 128], strides = [1, 1]} : vector<8x128xf32> to vector<1x128xf32>
    %cst_19 = arith.constant dense<0.000000e+00> : vector<1x128xf32>
    %100 = tpu.matmul %98, %6, %cst_19 {dimension_numbers = #tpu.dot_dimension_numbers<[1], [0], [0], [1], [0, 0, 1, 1], [], []>} : vector<1x32xf32>, vector<32x128xf32>, vector<1x128xf32> -> vector<1x128xf32>
    %101 = arith.addf %99, %100 : vector<1x128xf32>
    %102 = arith.negf %101 : vector<1x128xf32>
    %103 = math.exp %102 : vector<1x128xf32>
    %cst_20 = arith.constant 1.000000e+00 : f32
    %104 = vector.broadcast %cst_20 : f32 to vector<1x128xf32>
    %105 = arith.addf %104, %103 : vector<1x128xf32>
    %106 = arith.divf %104, %105 : vector<1x128xf32>
    %107 = math.tanh %101 : vector<1x128xf32>
    %108 = vector.extract_strided_slice %106 {offsets = [0, 0], sizes = [1, 32], strides = [1, 1]} : vector<1x128xf32> to vector<1x32xf32>
    %109 = vector.extract_strided_slice %106 {offsets = [0, 32], sizes = [1, 32], strides = [1, 1]} : vector<1x128xf32> to vector<1x32xf32>
    %110 = vector.extract_strided_slice %107 {offsets = [0, 64], sizes = [1, 32], strides = [1, 1]} : vector<1x128xf32> to vector<1x32xf32>
    %111 = vector.extract_strided_slice %106 {offsets = [0, 96], sizes = [1, 32], strides = [1, 1]} : vector<1x128xf32> to vector<1x32xf32>
    %112 = arith.mulf %109, %96 : vector<1x32xf32>
    %113 = arith.mulf %108, %110 : vector<1x32xf32>
    %114 = arith.addf %112, %113 : vector<1x32xf32>
    %115 = math.tanh %114 : vector<1x32xf32>
    %116 = arith.mulf %111, %115 : vector<1x32xf32>
    %117 = vector.extract_strided_slice %5 {offsets = [6, 0], sizes = [1, 128], strides = [1, 1]} : vector<8x128xf32> to vector<1x128xf32>
    %cst_21 = arith.constant dense<0.000000e+00> : vector<1x128xf32>
    %118 = tpu.matmul %116, %6, %cst_21 {dimension_numbers = #tpu.dot_dimension_numbers<[1], [0], [0], [1], [0, 0, 1, 1], [], []>} : vector<1x32xf32>, vector<32x128xf32>, vector<1x128xf32> -> vector<1x128xf32>
    %119 = arith.addf %117, %118 : vector<1x128xf32>
    %120 = arith.negf %119 : vector<1x128xf32>
    %121 = math.exp %120 : vector<1x128xf32>
    %cst_22 = arith.constant 1.000000e+00 : f32
    %122 = vector.broadcast %cst_22 : f32 to vector<1x128xf32>
    %123 = arith.addf %122, %121 : vector<1x128xf32>
    %124 = arith.divf %122, %123 : vector<1x128xf32>
    %125 = math.tanh %119 : vector<1x128xf32>
    %126 = vector.extract_strided_slice %124 {offsets = [0, 0], sizes = [1, 32], strides = [1, 1]} : vector<1x128xf32> to vector<1x32xf32>
    %127 = vector.extract_strided_slice %124 {offsets = [0, 32], sizes = [1, 32], strides = [1, 1]} : vector<1x128xf32> to vector<1x32xf32>
    %128 = vector.extract_strided_slice %125 {offsets = [0, 64], sizes = [1, 32], strides = [1, 1]} : vector<1x128xf32> to vector<1x32xf32>
    %129 = vector.extract_strided_slice %124 {offsets = [0, 96], sizes = [1, 32], strides = [1, 1]} : vector<1x128xf32> to vector<1x32xf32>
    %130 = arith.mulf %127, %114 : vector<1x32xf32>
    %131 = arith.mulf %126, %128 : vector<1x32xf32>
    %132 = arith.addf %130, %131 : vector<1x32xf32>
    %133 = math.tanh %132 : vector<1x32xf32>
    %134 = arith.mulf %129, %133 : vector<1x32xf32>
    %135 = vector.extract_strided_slice %5 {offsets = [7, 0], sizes = [1, 128], strides = [1, 1]} : vector<8x128xf32> to vector<1x128xf32>
    %cst_23 = arith.constant dense<0.000000e+00> : vector<1x128xf32>
    %136 = tpu.matmul %134, %6, %cst_23 {dimension_numbers = #tpu.dot_dimension_numbers<[1], [0], [0], [1], [0, 0, 1, 1], [], []>} : vector<1x32xf32>, vector<32x128xf32>, vector<1x128xf32> -> vector<1x128xf32>
    %137 = arith.addf %135, %136 : vector<1x128xf32>
    %138 = arith.negf %137 : vector<1x128xf32>
    %139 = math.exp %138 : vector<1x128xf32>
    %cst_24 = arith.constant 1.000000e+00 : f32
    %140 = vector.broadcast %cst_24 : f32 to vector<1x128xf32>
    %141 = arith.addf %140, %139 : vector<1x128xf32>
    %142 = arith.divf %140, %141 : vector<1x128xf32>
    %143 = math.tanh %137 : vector<1x128xf32>
    %144 = vector.extract_strided_slice %142 {offsets = [0, 0], sizes = [1, 32], strides = [1, 1]} : vector<1x128xf32> to vector<1x32xf32>
    %145 = vector.extract_strided_slice %142 {offsets = [0, 32], sizes = [1, 32], strides = [1, 1]} : vector<1x128xf32> to vector<1x32xf32>
    %146 = vector.extract_strided_slice %143 {offsets = [0, 64], sizes = [1, 32], strides = [1, 1]} : vector<1x128xf32> to vector<1x32xf32>
    %147 = vector.extract_strided_slice %142 {offsets = [0, 96], sizes = [1, 32], strides = [1, 1]} : vector<1x128xf32> to vector<1x32xf32>
    %148 = arith.mulf %145, %132 : vector<1x32xf32>
    %149 = arith.mulf %144, %146 : vector<1x32xf32>
    %150 = arith.addf %148, %149 : vector<1x32xf32>
    %151 = math.tanh %150 : vector<1x32xf32>
    %152 = arith.mulf %147, %151 : vector<1x32xf32>
    %153 = tpu.concatenate %26, %44, %62, %80, %98, %116, %134, %152 in 0 : vector<1x32xf32>, vector<1x32xf32>, vector<1x32xf32>, vector<1x32xf32>, vector<1x32xf32>, vector<1x32xf32>, vector<1x32xf32>, vector<1x32xf32> -> vector<8x32xf32>
    %c0_25 = arith.constant 0 : index
    %c0_26 = arith.constant 0 : index
    %154 = vector.load %arg4[%c0_25, %c0_26] : memref<32x128xf32, #tpu.memory_space<vmem>>, vector<32x128xf32>
    %cst_27 = arith.constant dense<0.000000e+00> : vector<8x128xf32>
    %155 = tpu.matmul %153, %154, %cst_27 {dimension_numbers = #tpu.dot_dimension_numbers<[1], [0], [0], [1], [0, 0, 1, 1], [], []>} : vector<8x32xf32>, vector<32x128xf32>, vector<8x128xf32> -> vector<8x128xf32>
    %c0_28 = arith.constant 0 : index
    %c0_29 = arith.constant 0 : index
    %156 = vector.load %arg6[%c0_28, %c0_29] : memref<1x128xf32, #tpu.memory_space<vmem>>, vector<1x128xf32>
    %157 = vector.broadcast %156 : vector<1x128xf32> to vector<8x128xf32>
    %158 = arith.addf %155, %157 : vector<8x128xf32>
    %c0_30 = arith.constant 0 : index
    %c0_31 = arith.constant 0 : index
    %159 = vector.load %arg5[%c0_30, %c0_31] : memref<32x128xf32, #tpu.memory_space<vmem>>, vector<32x128xf32>
    %cst_32 = arith.constant 0.000000e+00 : f32
    %160 = vector.broadcast %cst_32 : f32 to vector<1x32xf32>
    %cst_33 = arith.constant 0.000000e+00 : f32
    %161 = vector.broadcast %cst_33 : f32 to vector<1x32xf32>
    %162 = vector.extract_strided_slice %158 {offsets = [0, 0], sizes = [1, 128], strides = [1, 1]} : vector<8x128xf32> to vector<1x128xf32>
    %cst_34 = arith.constant dense<0.000000e+00> : vector<1x128xf32>
    %163 = tpu.matmul %160, %159, %cst_34 {dimension_numbers = #tpu.dot_dimension_numbers<[1], [0], [0], [1], [0, 0, 1, 1], [], []>} : vector<1x32xf32>, vector<32x128xf32>, vector<1x128xf32> -> vector<1x128xf32>
    %164 = arith.addf %162, %163 : vector<1x128xf32>
    %165 = arith.negf %164 : vector<1x128xf32>
    %166 = math.exp %165 : vector<1x128xf32>
    %cst_35 = arith.constant 1.000000e+00 : f32
    %167 = vector.broadcast %cst_35 : f32 to vector<1x128xf32>
    %168 = arith.addf %167, %166 : vector<1x128xf32>
    %169 = arith.divf %167, %168 : vector<1x128xf32>
    %170 = math.tanh %164 : vector<1x128xf32>
    %171 = vector.extract_strided_slice %169 {offsets = [0, 0], sizes = [1, 32], strides = [1, 1]} : vector<1x128xf32> to vector<1x32xf32>
    %172 = vector.extract_strided_slice %169 {offsets = [0, 32], sizes = [1, 32], strides = [1, 1]} : vector<1x128xf32> to vector<1x32xf32>
    %173 = vector.extract_strided_slice %170 {offsets = [0, 64], sizes = [1, 32], strides = [1, 1]} : vector<1x128xf32> to vector<1x32xf32>
    %174 = vector.extract_strided_slice %169 {offsets = [0, 96], sizes = [1, 32], strides = [1, 1]} : vector<1x128xf32> to vector<1x32xf32>
    %175 = arith.mulf %172, %161 : vector<1x32xf32>
    %176 = arith.mulf %171, %173 : vector<1x32xf32>
    %177 = arith.addf %175, %176 : vector<1x32xf32>
    %178 = math.tanh %177 : vector<1x32xf32>
    %179 = arith.mulf %174, %178 : vector<1x32xf32>
    %180 = vector.extract_strided_slice %158 {offsets = [1, 0], sizes = [1, 128], strides = [1, 1]} : vector<8x128xf32> to vector<1x128xf32>
    %cst_36 = arith.constant dense<0.000000e+00> : vector<1x128xf32>
    %181 = tpu.matmul %179, %159, %cst_36 {dimension_numbers = #tpu.dot_dimension_numbers<[1], [0], [0], [1], [0, 0, 1, 1], [], []>} : vector<1x32xf32>, vector<32x128xf32>, vector<1x128xf32> -> vector<1x128xf32>
    %182 = arith.addf %180, %181 : vector<1x128xf32>
    %183 = arith.negf %182 : vector<1x128xf32>
    %184 = math.exp %183 : vector<1x128xf32>
    %cst_37 = arith.constant 1.000000e+00 : f32
    %185 = vector.broadcast %cst_37 : f32 to vector<1x128xf32>
    %186 = arith.addf %185, %184 : vector<1x128xf32>
    %187 = arith.divf %185, %186 : vector<1x128xf32>
    %188 = math.tanh %182 : vector<1x128xf32>
    %189 = vector.extract_strided_slice %187 {offsets = [0, 0], sizes = [1, 32], strides = [1, 1]} : vector<1x128xf32> to vector<1x32xf32>
    %190 = vector.extract_strided_slice %187 {offsets = [0, 32], sizes = [1, 32], strides = [1, 1]} : vector<1x128xf32> to vector<1x32xf32>
    %191 = vector.extract_strided_slice %188 {offsets = [0, 64], sizes = [1, 32], strides = [1, 1]} : vector<1x128xf32> to vector<1x32xf32>
    %192 = vector.extract_strided_slice %187 {offsets = [0, 96], sizes = [1, 32], strides = [1, 1]} : vector<1x128xf32> to vector<1x32xf32>
    %193 = arith.mulf %190, %177 : vector<1x32xf32>
    %194 = arith.mulf %189, %191 : vector<1x32xf32>
    %195 = arith.addf %193, %194 : vector<1x32xf32>
    %196 = math.tanh %195 : vector<1x32xf32>
    %197 = arith.mulf %192, %196 : vector<1x32xf32>
    %198 = vector.extract_strided_slice %158 {offsets = [2, 0], sizes = [1, 128], strides = [1, 1]} : vector<8x128xf32> to vector<1x128xf32>
    %cst_38 = arith.constant dense<0.000000e+00> : vector<1x128xf32>
    %199 = tpu.matmul %197, %159, %cst_38 {dimension_numbers = #tpu.dot_dimension_numbers<[1], [0], [0], [1], [0, 0, 1, 1], [], []>} : vector<1x32xf32>, vector<32x128xf32>, vector<1x128xf32> -> vector<1x128xf32>
    %200 = arith.addf %198, %199 : vector<1x128xf32>
    %201 = arith.negf %200 : vector<1x128xf32>
    %202 = math.exp %201 : vector<1x128xf32>
    %cst_39 = arith.constant 1.000000e+00 : f32
    %203 = vector.broadcast %cst_39 : f32 to vector<1x128xf32>
    %204 = arith.addf %203, %202 : vector<1x128xf32>
    %205 = arith.divf %203, %204 : vector<1x128xf32>
    %206 = math.tanh %200 : vector<1x128xf32>
    %207 = vector.extract_strided_slice %205 {offsets = [0, 0], sizes = [1, 32], strides = [1, 1]} : vector<1x128xf32> to vector<1x32xf32>
    %208 = vector.extract_strided_slice %205 {offsets = [0, 32], sizes = [1, 32], strides = [1, 1]} : vector<1x128xf32> to vector<1x32xf32>
    %209 = vector.extract_strided_slice %206 {offsets = [0, 64], sizes = [1, 32], strides = [1, 1]} : vector<1x128xf32> to vector<1x32xf32>
    %210 = vector.extract_strided_slice %205 {offsets = [0, 96], sizes = [1, 32], strides = [1, 1]} : vector<1x128xf32> to vector<1x32xf32>
    %211 = arith.mulf %208, %195 : vector<1x32xf32>
    %212 = arith.mulf %207, %209 : vector<1x32xf32>
    %213 = arith.addf %211, %212 : vector<1x32xf32>
    %214 = math.tanh %213 : vector<1x32xf32>
    %215 = arith.mulf %210, %214 : vector<1x32xf32>
    %216 = vector.extract_strided_slice %158 {offsets = [3, 0], sizes = [1, 128], strides = [1, 1]} : vector<8x128xf32> to vector<1x128xf32>
    %cst_40 = arith.constant dense<0.000000e+00> : vector<1x128xf32>
    %217 = tpu.matmul %215, %159, %cst_40 {dimension_numbers = #tpu.dot_dimension_numbers<[1], [0], [0], [1], [0, 0, 1, 1], [], []>} : vector<1x32xf32>, vector<32x128xf32>, vector<1x128xf32> -> vector<1x128xf32>
    %218 = arith.addf %216, %217 : vector<1x128xf32>
    %219 = arith.negf %218 : vector<1x128xf32>
    %220 = math.exp %219 : vector<1x128xf32>
    %cst_41 = arith.constant 1.000000e+00 : f32
    %221 = vector.broadcast %cst_41 : f32 to vector<1x128xf32>
    %222 = arith.addf %221, %220 : vector<1x128xf32>
    %223 = arith.divf %221, %222 : vector<1x128xf32>
    %224 = math.tanh %218 : vector<1x128xf32>
    %225 = vector.extract_strided_slice %223 {offsets = [0, 0], sizes = [1, 32], strides = [1, 1]} : vector<1x128xf32> to vector<1x32xf32>
    %226 = vector.extract_strided_slice %223 {offsets = [0, 32], sizes = [1, 32], strides = [1, 1]} : vector<1x128xf32> to vector<1x32xf32>
    %227 = vector.extract_strided_slice %224 {offsets = [0, 64], sizes = [1, 32], strides = [1, 1]} : vector<1x128xf32> to vector<1x32xf32>
    %228 = vector.extract_strided_slice %223 {offsets = [0, 96], sizes = [1, 32], strides = [1, 1]} : vector<1x128xf32> to vector<1x32xf32>
    %229 = arith.mulf %226, %213 : vector<1x32xf32>
    %230 = arith.mulf %225, %227 : vector<1x32xf32>
    %231 = arith.addf %229, %230 : vector<1x32xf32>
    %232 = math.tanh %231 : vector<1x32xf32>
    %233 = arith.mulf %228, %232 : vector<1x32xf32>
    %234 = vector.extract_strided_slice %158 {offsets = [4, 0], sizes = [1, 128], strides = [1, 1]} : vector<8x128xf32> to vector<1x128xf32>
    %cst_42 = arith.constant dense<0.000000e+00> : vector<1x128xf32>
    %235 = tpu.matmul %233, %159, %cst_42 {dimension_numbers = #tpu.dot_dimension_numbers<[1], [0], [0], [1], [0, 0, 1, 1], [], []>} : vector<1x32xf32>, vector<32x128xf32>, vector<1x128xf32> -> vector<1x128xf32>
    %236 = arith.addf %234, %235 : vector<1x128xf32>
    %237 = arith.negf %236 : vector<1x128xf32>
    %238 = math.exp %237 : vector<1x128xf32>
    %cst_43 = arith.constant 1.000000e+00 : f32
    %239 = vector.broadcast %cst_43 : f32 to vector<1x128xf32>
    %240 = arith.addf %239, %238 : vector<1x128xf32>
    %241 = arith.divf %239, %240 : vector<1x128xf32>
    %242 = math.tanh %236 : vector<1x128xf32>
    %243 = vector.extract_strided_slice %241 {offsets = [0, 0], sizes = [1, 32], strides = [1, 1]} : vector<1x128xf32> to vector<1x32xf32>
    %244 = vector.extract_strided_slice %241 {offsets = [0, 32], sizes = [1, 32], strides = [1, 1]} : vector<1x128xf32> to vector<1x32xf32>
    %245 = vector.extract_strided_slice %242 {offsets = [0, 64], sizes = [1, 32], strides = [1, 1]} : vector<1x128xf32> to vector<1x32xf32>
    %246 = vector.extract_strided_slice %241 {offsets = [0, 96], sizes = [1, 32], strides = [1, 1]} : vector<1x128xf32> to vector<1x32xf32>
    %247 = arith.mulf %244, %231 : vector<1x32xf32>
    %248 = arith.mulf %243, %245 : vector<1x32xf32>
    %249 = arith.addf %247, %248 : vector<1x32xf32>
    %250 = math.tanh %249 : vector<1x32xf32>
    %251 = arith.mulf %246, %250 : vector<1x32xf32>
    %252 = vector.extract_strided_slice %158 {offsets = [5, 0], sizes = [1, 128], strides = [1, 1]} : vector<8x128xf32> to vector<1x128xf32>
    %cst_44 = arith.constant dense<0.000000e+00> : vector<1x128xf32>
    %253 = tpu.matmul %251, %159, %cst_44 {dimension_numbers = #tpu.dot_dimension_numbers<[1], [0], [0], [1], [0, 0, 1, 1], [], []>} : vector<1x32xf32>, vector<32x128xf32>, vector<1x128xf32> -> vector<1x128xf32>
    %254 = arith.addf %252, %253 : vector<1x128xf32>
    %255 = arith.negf %254 : vector<1x128xf32>
    %256 = math.exp %255 : vector<1x128xf32>
    %cst_45 = arith.constant 1.000000e+00 : f32
    %257 = vector.broadcast %cst_45 : f32 to vector<1x128xf32>
    %258 = arith.addf %257, %256 : vector<1x128xf32>
    %259 = arith.divf %257, %258 : vector<1x128xf32>
    %260 = math.tanh %254 : vector<1x128xf32>
    %261 = vector.extract_strided_slice %259 {offsets = [0, 0], sizes = [1, 32], strides = [1, 1]} : vector<1x128xf32> to vector<1x32xf32>
    %262 = vector.extract_strided_slice %259 {offsets = [0, 32], sizes = [1, 32], strides = [1, 1]} : vector<1x128xf32> to vector<1x32xf32>
    %263 = vector.extract_strided_slice %260 {offsets = [0, 64], sizes = [1, 32], strides = [1, 1]} : vector<1x128xf32> to vector<1x32xf32>
    %264 = vector.extract_strided_slice %259 {offsets = [0, 96], sizes = [1, 32], strides = [1, 1]} : vector<1x128xf32> to vector<1x32xf32>
    %265 = arith.mulf %262, %249 : vector<1x32xf32>
    %266 = arith.mulf %261, %263 : vector<1x32xf32>
    %267 = arith.addf %265, %266 : vector<1x32xf32>
    %268 = math.tanh %267 : vector<1x32xf32>
    %269 = arith.mulf %264, %268 : vector<1x32xf32>
    %270 = vector.extract_strided_slice %158 {offsets = [6, 0], sizes = [1, 128], strides = [1, 1]} : vector<8x128xf32> to vector<1x128xf32>
    %cst_46 = arith.constant dense<0.000000e+00> : vector<1x128xf32>
    %271 = tpu.matmul %269, %159, %cst_46 {dimension_numbers = #tpu.dot_dimension_numbers<[1], [0], [0], [1], [0, 0, 1, 1], [], []>} : vector<1x32xf32>, vector<32x128xf32>, vector<1x128xf32> -> vector<1x128xf32>
    %272 = arith.addf %270, %271 : vector<1x128xf32>
    %273 = arith.negf %272 : vector<1x128xf32>
    %274 = math.exp %273 : vector<1x128xf32>
    %cst_47 = arith.constant 1.000000e+00 : f32
    %275 = vector.broadcast %cst_47 : f32 to vector<1x128xf32>
    %276 = arith.addf %275, %274 : vector<1x128xf32>
    %277 = arith.divf %275, %276 : vector<1x128xf32>
    %278 = math.tanh %272 : vector<1x128xf32>
    %279 = vector.extract_strided_slice %277 {offsets = [0, 0], sizes = [1, 32], strides = [1, 1]} : vector<1x128xf32> to vector<1x32xf32>
    %280 = vector.extract_strided_slice %277 {offsets = [0, 32], sizes = [1, 32], strides = [1, 1]} : vector<1x128xf32> to vector<1x32xf32>
    %281 = vector.extract_strided_slice %278 {offsets = [0, 64], sizes = [1, 32], strides = [1, 1]} : vector<1x128xf32> to vector<1x32xf32>
    %282 = vector.extract_strided_slice %277 {offsets = [0, 96], sizes = [1, 32], strides = [1, 1]} : vector<1x128xf32> to vector<1x32xf32>
    %283 = arith.mulf %280, %267 : vector<1x32xf32>
    %284 = arith.mulf %279, %281 : vector<1x32xf32>
    %285 = arith.addf %283, %284 : vector<1x32xf32>
    %286 = math.tanh %285 : vector<1x32xf32>
    %287 = arith.mulf %282, %286 : vector<1x32xf32>
    %288 = vector.extract_strided_slice %158 {offsets = [7, 0], sizes = [1, 128], strides = [1, 1]} : vector<8x128xf32> to vector<1x128xf32>
    %cst_48 = arith.constant dense<0.000000e+00> : vector<1x128xf32>
    %289 = tpu.matmul %287, %159, %cst_48 {dimension_numbers = #tpu.dot_dimension_numbers<[1], [0], [0], [1], [0, 0, 1, 1], [], []>} : vector<1x32xf32>, vector<32x128xf32>, vector<1x128xf32> -> vector<1x128xf32>
    %290 = arith.addf %288, %289 : vector<1x128xf32>
    %291 = arith.negf %290 : vector<1x128xf32>
    %292 = math.exp %291 : vector<1x128xf32>
    %cst_49 = arith.constant 1.000000e+00 : f32
    %293 = vector.broadcast %cst_49 : f32 to vector<1x128xf32>
    %294 = arith.addf %293, %292 : vector<1x128xf32>
    %295 = arith.divf %293, %294 : vector<1x128xf32>
    %296 = math.tanh %290 : vector<1x128xf32>
    %297 = vector.extract_strided_slice %295 {offsets = [0, 0], sizes = [1, 32], strides = [1, 1]} : vector<1x128xf32> to vector<1x32xf32>
    %298 = vector.extract_strided_slice %295 {offsets = [0, 32], sizes = [1, 32], strides = [1, 1]} : vector<1x128xf32> to vector<1x32xf32>
    %299 = vector.extract_strided_slice %296 {offsets = [0, 64], sizes = [1, 32], strides = [1, 1]} : vector<1x128xf32> to vector<1x32xf32>
    %300 = vector.extract_strided_slice %295 {offsets = [0, 96], sizes = [1, 32], strides = [1, 1]} : vector<1x128xf32> to vector<1x32xf32>
    %301 = arith.mulf %298, %285 : vector<1x32xf32>
    %302 = arith.mulf %297, %299 : vector<1x32xf32>
    %303 = arith.addf %301, %302 : vector<1x32xf32>
    %304 = math.tanh %303 : vector<1x32xf32>
    %305 = arith.mulf %300, %304 : vector<1x32xf32>
    %306 = tpu.concatenate %179, %197, %215, %233, %251, %269, %287, %305 in 0 : vector<1x32xf32>, vector<1x32xf32>, vector<1x32xf32>, vector<1x32xf32>, vector<1x32xf32>, vector<1x32xf32>, vector<1x32xf32>, vector<1x32xf32> -> vector<8x32xf32>
    %c0_50 = arith.constant 0 : index
    %c0_51 = arith.constant 0 : index
    %307 = vector.load %arg7[%c0_50, %c0_51] : memref<32x128xf32, #tpu.memory_space<vmem>>, vector<32x128xf32>
    %cst_52 = arith.constant dense<0.000000e+00> : vector<8x128xf32>
    %308 = tpu.matmul %306, %307, %cst_52 {dimension_numbers = #tpu.dot_dimension_numbers<[1], [0], [0], [1], [0, 0, 1, 1], [], []>} : vector<8x32xf32>, vector<32x128xf32>, vector<8x128xf32> -> vector<8x128xf32>
    %c0_53 = arith.constant 0 : index
    %c0_54 = arith.constant 0 : index
    %309 = vector.load %arg9[%c0_53, %c0_54] : memref<1x128xf32, #tpu.memory_space<vmem>>, vector<1x128xf32>
    %310 = vector.broadcast %309 : vector<1x128xf32> to vector<8x128xf32>
    %311 = arith.addf %308, %310 : vector<8x128xf32>
    %c0_55 = arith.constant 0 : index
    %c0_56 = arith.constant 0 : index
    %312 = vector.load %arg8[%c0_55, %c0_56] : memref<32x128xf32, #tpu.memory_space<vmem>>, vector<32x128xf32>
    %cst_57 = arith.constant 0.000000e+00 : f32
    %313 = vector.broadcast %cst_57 : f32 to vector<1x32xf32>
    %cst_58 = arith.constant 0.000000e+00 : f32
    %314 = vector.broadcast %cst_58 : f32 to vector<1x32xf32>
    %315 = vector.extract_strided_slice %311 {offsets = [0, 0], sizes = [1, 128], strides = [1, 1]} : vector<8x128xf32> to vector<1x128xf32>
    %cst_59 = arith.constant dense<0.000000e+00> : vector<1x128xf32>
    %316 = tpu.matmul %313, %312, %cst_59 {dimension_numbers = #tpu.dot_dimension_numbers<[1], [0], [0], [1], [0, 0, 1, 1], [], []>} : vector<1x32xf32>, vector<32x128xf32>, vector<1x128xf32> -> vector<1x128xf32>
    %317 = arith.addf %315, %316 : vector<1x128xf32>
    %318 = arith.negf %317 : vector<1x128xf32>
    %319 = math.exp %318 : vector<1x128xf32>
    %cst_60 = arith.constant 1.000000e+00 : f32
    %320 = vector.broadcast %cst_60 : f32 to vector<1x128xf32>
    %321 = arith.addf %320, %319 : vector<1x128xf32>
    %322 = arith.divf %320, %321 : vector<1x128xf32>
    %323 = math.tanh %317 : vector<1x128xf32>
    %324 = vector.extract_strided_slice %322 {offsets = [0, 0], sizes = [1, 32], strides = [1, 1]} : vector<1x128xf32> to vector<1x32xf32>
    %325 = vector.extract_strided_slice %322 {offsets = [0, 32], sizes = [1, 32], strides = [1, 1]} : vector<1x128xf32> to vector<1x32xf32>
    %326 = vector.extract_strided_slice %323 {offsets = [0, 64], sizes = [1, 32], strides = [1, 1]} : vector<1x128xf32> to vector<1x32xf32>
    %327 = vector.extract_strided_slice %322 {offsets = [0, 96], sizes = [1, 32], strides = [1, 1]} : vector<1x128xf32> to vector<1x32xf32>
    %328 = arith.mulf %325, %314 : vector<1x32xf32>
    %329 = arith.mulf %324, %326 : vector<1x32xf32>
    %330 = arith.addf %328, %329 : vector<1x32xf32>
    %331 = math.tanh %330 : vector<1x32xf32>
    %332 = arith.mulf %327, %331 : vector<1x32xf32>
    %333 = vector.extract_strided_slice %311 {offsets = [1, 0], sizes = [1, 128], strides = [1, 1]} : vector<8x128xf32> to vector<1x128xf32>
    %cst_61 = arith.constant dense<0.000000e+00> : vector<1x128xf32>
    %334 = tpu.matmul %332, %312, %cst_61 {dimension_numbers = #tpu.dot_dimension_numbers<[1], [0], [0], [1], [0, 0, 1, 1], [], []>} : vector<1x32xf32>, vector<32x128xf32>, vector<1x128xf32> -> vector<1x128xf32>
    %335 = arith.addf %333, %334 : vector<1x128xf32>
    %336 = arith.negf %335 : vector<1x128xf32>
    %337 = math.exp %336 : vector<1x128xf32>
    %cst_62 = arith.constant 1.000000e+00 : f32
    %338 = vector.broadcast %cst_62 : f32 to vector<1x128xf32>
    %339 = arith.addf %338, %337 : vector<1x128xf32>
    %340 = arith.divf %338, %339 : vector<1x128xf32>
    %341 = math.tanh %335 : vector<1x128xf32>
    %342 = vector.extract_strided_slice %340 {offsets = [0, 0], sizes = [1, 32], strides = [1, 1]} : vector<1x128xf32> to vector<1x32xf32>
    %343 = vector.extract_strided_slice %340 {offsets = [0, 32], sizes = [1, 32], strides = [1, 1]} : vector<1x128xf32> to vector<1x32xf32>
    %344 = vector.extract_strided_slice %341 {offsets = [0, 64], sizes = [1, 32], strides = [1, 1]} : vector<1x128xf32> to vector<1x32xf32>
    %345 = vector.extract_strided_slice %340 {offsets = [0, 96], sizes = [1, 32], strides = [1, 1]} : vector<1x128xf32> to vector<1x32xf32>
    %346 = arith.mulf %343, %330 : vector<1x32xf32>
    %347 = arith.mulf %342, %344 : vector<1x32xf32>
    %348 = arith.addf %346, %347 : vector<1x32xf32>
    %349 = math.tanh %348 : vector<1x32xf32>
    %350 = arith.mulf %345, %349 : vector<1x32xf32>
    %351 = vector.extract_strided_slice %311 {offsets = [2, 0], sizes = [1, 128], strides = [1, 1]} : vector<8x128xf32> to vector<1x128xf32>
    %cst_63 = arith.constant dense<0.000000e+00> : vector<1x128xf32>
    %352 = tpu.matmul %350, %312, %cst_63 {dimension_numbers = #tpu.dot_dimension_numbers<[1], [0], [0], [1], [0, 0, 1, 1], [], []>} : vector<1x32xf32>, vector<32x128xf32>, vector<1x128xf32> -> vector<1x128xf32>
    %353 = arith.addf %351, %352 : vector<1x128xf32>
    %354 = arith.negf %353 : vector<1x128xf32>
    %355 = math.exp %354 : vector<1x128xf32>
    %cst_64 = arith.constant 1.000000e+00 : f32
    %356 = vector.broadcast %cst_64 : f32 to vector<1x128xf32>
    %357 = arith.addf %356, %355 : vector<1x128xf32>
    %358 = arith.divf %356, %357 : vector<1x128xf32>
    %359 = math.tanh %353 : vector<1x128xf32>
    %360 = vector.extract_strided_slice %358 {offsets = [0, 0], sizes = [1, 32], strides = [1, 1]} : vector<1x128xf32> to vector<1x32xf32>
    %361 = vector.extract_strided_slice %358 {offsets = [0, 32], sizes = [1, 32], strides = [1, 1]} : vector<1x128xf32> to vector<1x32xf32>
    %362 = vector.extract_strided_slice %359 {offsets = [0, 64], sizes = [1, 32], strides = [1, 1]} : vector<1x128xf32> to vector<1x32xf32>
    %363 = vector.extract_strided_slice %358 {offsets = [0, 96], sizes = [1, 32], strides = [1, 1]} : vector<1x128xf32> to vector<1x32xf32>
    %364 = arith.mulf %361, %348 : vector<1x32xf32>
    %365 = arith.mulf %360, %362 : vector<1x32xf32>
    %366 = arith.addf %364, %365 : vector<1x32xf32>
    %367 = math.tanh %366 : vector<1x32xf32>
    %368 = arith.mulf %363, %367 : vector<1x32xf32>
    %369 = vector.extract_strided_slice %311 {offsets = [3, 0], sizes = [1, 128], strides = [1, 1]} : vector<8x128xf32> to vector<1x128xf32>
    %cst_65 = arith.constant dense<0.000000e+00> : vector<1x128xf32>
    %370 = tpu.matmul %368, %312, %cst_65 {dimension_numbers = #tpu.dot_dimension_numbers<[1], [0], [0], [1], [0, 0, 1, 1], [], []>} : vector<1x32xf32>, vector<32x128xf32>, vector<1x128xf32> -> vector<1x128xf32>
    %371 = arith.addf %369, %370 : vector<1x128xf32>
    %372 = arith.negf %371 : vector<1x128xf32>
    %373 = math.exp %372 : vector<1x128xf32>
    %cst_66 = arith.constant 1.000000e+00 : f32
    %374 = vector.broadcast %cst_66 : f32 to vector<1x128xf32>
    %375 = arith.addf %374, %373 : vector<1x128xf32>
    %376 = arith.divf %374, %375 : vector<1x128xf32>
    %377 = math.tanh %371 : vector<1x128xf32>
    %378 = vector.extract_strided_slice %376 {offsets = [0, 0], sizes = [1, 32], strides = [1, 1]} : vector<1x128xf32> to vector<1x32xf32>
    %379 = vector.extract_strided_slice %376 {offsets = [0, 32], sizes = [1, 32], strides = [1, 1]} : vector<1x128xf32> to vector<1x32xf32>
    %380 = vector.extract_strided_slice %377 {offsets = [0, 64], sizes = [1, 32], strides = [1, 1]} : vector<1x128xf32> to vector<1x32xf32>
    %381 = vector.extract_strided_slice %376 {offsets = [0, 96], sizes = [1, 32], strides = [1, 1]} : vector<1x128xf32> to vector<1x32xf32>
    %382 = arith.mulf %379, %366 : vector<1x32xf32>
    %383 = arith.mulf %378, %380 : vector<1x32xf32>
    %384 = arith.addf %382, %383 : vector<1x32xf32>
    %385 = math.tanh %384 : vector<1x32xf32>
    %386 = arith.mulf %381, %385 : vector<1x32xf32>
    %387 = vector.extract_strided_slice %311 {offsets = [4, 0], sizes = [1, 128], strides = [1, 1]} : vector<8x128xf32> to vector<1x128xf32>
    %cst_67 = arith.constant dense<0.000000e+00> : vector<1x128xf32>
    %388 = tpu.matmul %386, %312, %cst_67 {dimension_numbers = #tpu.dot_dimension_numbers<[1], [0], [0], [1], [0, 0, 1, 1], [], []>} : vector<1x32xf32>, vector<32x128xf32>, vector<1x128xf32> -> vector<1x128xf32>
    %389 = arith.addf %387, %388 : vector<1x128xf32>
    %390 = arith.negf %389 : vector<1x128xf32>
    %391 = math.exp %390 : vector<1x128xf32>
    %cst_68 = arith.constant 1.000000e+00 : f32
    %392 = vector.broadcast %cst_68 : f32 to vector<1x128xf32>
    %393 = arith.addf %392, %391 : vector<1x128xf32>
    %394 = arith.divf %392, %393 : vector<1x128xf32>
    %395 = math.tanh %389 : vector<1x128xf32>
    %396 = vector.extract_strided_slice %394 {offsets = [0, 0], sizes = [1, 32], strides = [1, 1]} : vector<1x128xf32> to vector<1x32xf32>
    %397 = vector.extract_strided_slice %394 {offsets = [0, 32], sizes = [1, 32], strides = [1, 1]} : vector<1x128xf32> to vector<1x32xf32>
    %398 = vector.extract_strided_slice %395 {offsets = [0, 64], sizes = [1, 32], strides = [1, 1]} : vector<1x128xf32> to vector<1x32xf32>
    %399 = vector.extract_strided_slice %394 {offsets = [0, 96], sizes = [1, 32], strides = [1, 1]} : vector<1x128xf32> to vector<1x32xf32>
    %400 = arith.mulf %397, %384 : vector<1x32xf32>
    %401 = arith.mulf %396, %398 : vector<1x32xf32>
    %402 = arith.addf %400, %401 : vector<1x32xf32>
    %403 = math.tanh %402 : vector<1x32xf32>
    %404 = arith.mulf %399, %403 : vector<1x32xf32>
    %405 = vector.extract_strided_slice %311 {offsets = [5, 0], sizes = [1, 128], strides = [1, 1]} : vector<8x128xf32> to vector<1x128xf32>
    %cst_69 = arith.constant dense<0.000000e+00> : vector<1x128xf32>
    %406 = tpu.matmul %404, %312, %cst_69 {dimension_numbers = #tpu.dot_dimension_numbers<[1], [0], [0], [1], [0, 0, 1, 1], [], []>} : vector<1x32xf32>, vector<32x128xf32>, vector<1x128xf32> -> vector<1x128xf32>
    %407 = arith.addf %405, %406 : vector<1x128xf32>
    %408 = arith.negf %407 : vector<1x128xf32>
    %409 = math.exp %408 : vector<1x128xf32>
    %cst_70 = arith.constant 1.000000e+00 : f32
    %410 = vector.broadcast %cst_70 : f32 to vector<1x128xf32>
    %411 = arith.addf %410, %409 : vector<1x128xf32>
    %412 = arith.divf %410, %411 : vector<1x128xf32>
    %413 = math.tanh %407 : vector<1x128xf32>
    %414 = vector.extract_strided_slice %412 {offsets = [0, 0], sizes = [1, 32], strides = [1, 1]} : vector<1x128xf32> to vector<1x32xf32>
    %415 = vector.extract_strided_slice %412 {offsets = [0, 32], sizes = [1, 32], strides = [1, 1]} : vector<1x128xf32> to vector<1x32xf32>
    %416 = vector.extract_strided_slice %413 {offsets = [0, 64], sizes = [1, 32], strides = [1, 1]} : vector<1x128xf32> to vector<1x32xf32>
    %417 = vector.extract_strided_slice %412 {offsets = [0, 96], sizes = [1, 32], strides = [1, 1]} : vector<1x128xf32> to vector<1x32xf32>
    %418 = arith.mulf %415, %402 : vector<1x32xf32>
    %419 = arith.mulf %414, %416 : vector<1x32xf32>
    %420 = arith.addf %418, %419 : vector<1x32xf32>
    %421 = math.tanh %420 : vector<1x32xf32>
    %422 = arith.mulf %417, %421 : vector<1x32xf32>
    %423 = vector.extract_strided_slice %311 {offsets = [6, 0], sizes = [1, 128], strides = [1, 1]} : vector<8x128xf32> to vector<1x128xf32>
    %cst_71 = arith.constant dense<0.000000e+00> : vector<1x128xf32>
    %424 = tpu.matmul %422, %312, %cst_71 {dimension_numbers = #tpu.dot_dimension_numbers<[1], [0], [0], [1], [0, 0, 1, 1], [], []>} : vector<1x32xf32>, vector<32x128xf32>, vector<1x128xf32> -> vector<1x128xf32>
    %425 = arith.addf %423, %424 : vector<1x128xf32>
    %426 = arith.negf %425 : vector<1x128xf32>
    %427 = math.exp %426 : vector<1x128xf32>
    %cst_72 = arith.constant 1.000000e+00 : f32
    %428 = vector.broadcast %cst_72 : f32 to vector<1x128xf32>
    %429 = arith.addf %428, %427 : vector<1x128xf32>
    %430 = arith.divf %428, %429 : vector<1x128xf32>
    %431 = math.tanh %425 : vector<1x128xf32>
    %432 = vector.extract_strided_slice %430 {offsets = [0, 0], sizes = [1, 32], strides = [1, 1]} : vector<1x128xf32> to vector<1x32xf32>
    %433 = vector.extract_strided_slice %430 {offsets = [0, 32], sizes = [1, 32], strides = [1, 1]} : vector<1x128xf32> to vector<1x32xf32>
    %434 = vector.extract_strided_slice %431 {offsets = [0, 64], sizes = [1, 32], strides = [1, 1]} : vector<1x128xf32> to vector<1x32xf32>
    %435 = vector.extract_strided_slice %430 {offsets = [0, 96], sizes = [1, 32], strides = [1, 1]} : vector<1x128xf32> to vector<1x32xf32>
    %436 = arith.mulf %433, %420 : vector<1x32xf32>
    %437 = arith.mulf %432, %434 : vector<1x32xf32>
    %438 = arith.addf %436, %437 : vector<1x32xf32>
    %439 = math.tanh %438 : vector<1x32xf32>
    %440 = arith.mulf %435, %439 : vector<1x32xf32>
    %441 = vector.extract_strided_slice %311 {offsets = [7, 0], sizes = [1, 128], strides = [1, 1]} : vector<8x128xf32> to vector<1x128xf32>
    %cst_73 = arith.constant dense<0.000000e+00> : vector<1x128xf32>
    %442 = tpu.matmul %440, %312, %cst_73 {dimension_numbers = #tpu.dot_dimension_numbers<[1], [0], [0], [1], [0, 0, 1, 1], [], []>} : vector<1x32xf32>, vector<32x128xf32>, vector<1x128xf32> -> vector<1x128xf32>
    %443 = arith.addf %441, %442 : vector<1x128xf32>
    %444 = arith.negf %443 : vector<1x128xf32>
    %445 = math.exp %444 : vector<1x128xf32>
    %cst_74 = arith.constant 1.000000e+00 : f32
    %446 = vector.broadcast %cst_74 : f32 to vector<1x128xf32>
    %447 = arith.addf %446, %445 : vector<1x128xf32>
    %448 = arith.divf %446, %447 : vector<1x128xf32>
    %449 = math.tanh %443 : vector<1x128xf32>
    %450 = vector.extract_strided_slice %448 {offsets = [0, 0], sizes = [1, 32], strides = [1, 1]} : vector<1x128xf32> to vector<1x32xf32>
    %451 = vector.extract_strided_slice %448 {offsets = [0, 32], sizes = [1, 32], strides = [1, 1]} : vector<1x128xf32> to vector<1x32xf32>
    %452 = vector.extract_strided_slice %449 {offsets = [0, 64], sizes = [1, 32], strides = [1, 1]} : vector<1x128xf32> to vector<1x32xf32>
    %453 = vector.extract_strided_slice %448 {offsets = [0, 96], sizes = [1, 32], strides = [1, 1]} : vector<1x128xf32> to vector<1x32xf32>
    %454 = arith.mulf %451, %438 : vector<1x32xf32>
    %455 = arith.mulf %450, %452 : vector<1x32xf32>
    %456 = arith.addf %454, %455 : vector<1x32xf32>
    %457 = math.tanh %456 : vector<1x32xf32>
    %458 = arith.mulf %453, %457 : vector<1x32xf32>
    %459 = tpu.concatenate %152, %305, %458 in 0 : vector<1x32xf32>, vector<1x32xf32>, vector<1x32xf32> -> vector<3x32xf32>
    %c0_75 = arith.constant 0 : index
    %c0_76 = arith.constant 0 : index
    %460 = vector.load %arg10[%c0_75, %c0_76] : memref<3x32xf32, #tpu.memory_space<vmem>>, vector<3x32xf32>
    tpu.vector_store %arg10[%c0_75, %c0_76], %459 {strides = array<i32>} : memref<3x32xf32, #tpu.memory_space<vmem>>, vector<3x32xf32>,
    %461 = tpu.concatenate %150, %303, %456 in 0 : vector<1x32xf32>, vector<1x32xf32>, vector<1x32xf32> -> vector<3x32xf32>
    %c0_77 = arith.constant 0 : index
    %c0_78 = arith.constant 0 : index
    %462 = vector.load %arg11[%c0_77, %c0_78] : memref<3x32xf32, #tpu.memory_space<vmem>>, vector<3x32xf32>
    tpu.vector_store %arg11[%c0_77, %c0_78], %461 {strides = array<i32>} : memref<3x32xf32, #tpu.memory_space<vmem>>, vector<3x32xf32>,
    return
  }
}

</mosaic_0001>

<bundles_post_ra>
// kernel: tpu_custom_call.1
= control target key start
LH: loop header
LB: loop body
LE: loop exit
PB: predicated region body
PF: predicated region fallthrough
CT: control target
= control target key end

     0   :  { %17 = vsyncpa [#allocation3], 0  ;;  %s4522_s0 = inlined_call_operand.vmem [shape: f32[8,4], index: 0, kind: input, shape index: {}]   ;;  %s4523_s1 = inlined_call_operand.vmem [shape: f32[4,128], index: 1, kind: input, shape index: {}]   ;;  %s4524_s2 = inlined_call_operand.hbm [shape: f32[32,128], index: 2, kind: input, shape index: {}]   ;;  %s4525_s3 = inlined_call_operand.vmem [shape: f32[1,128], index: 3, kind: input, shape index: {}]   ;;  %s4526_s4 = inlined_call_operand.hbm [shape: f32[32,128], index: 4, kind: input, shape index: {}]   ;;  %s4527_s5 = inlined_call_operand.hbm [shape: f32[32,128], index: 5, kind: input, shape index: {}]   ;;  %s4528_s6 = inlined_call_operand.vmem [shape: f32[1,128], index: 6, kind: input, shape index: {}]   ;;  %s4529_s7 = inlined_call_operand.vmem [shape: f32[32,128], index: 7, kind: input, shape index: {}]   ;;  %s4530_s8 = inlined_call_operand.hbm [shape: f32[32,128], index: 8, kind: input, shape index: {}]   ;;  %s4531_s9 = inlined_call_operand.vmem [shape: f32[1,128], index: 9, kind: input, shape index: {}]   ;;  %s4532_s10 = inlined_call_operand.hbm [shape: f32[3,32], index: 10, kind: output, shape index: {0}]   ;;  %s4533_s11 = inlined_call_operand.hbm [shape: f32[3,32], index: 11, kind: output, shape index: {1}]  }
   0x1   :  { %18 = vsyncpa [#allocation6], 0 }
   0x2   :  { %19 = vsyncpa [#allocation9], 0 }
   0x3   :  { %20 = vsyncpa [#allocation4], 0 }
   0x4   :  { %21 = vsyncpa [#allocation12], 0  ;;  %s3961_s17 = smov [#allocation5]   ;;  %s3962_s19 = smov [#allocation2]  }
   0x5   :  { %s45_s18 = sshll.u32 %s3961_s17, 4  ;;  %s31_s20 = sshll.u32 %s3962_s19, 4  ;;  %s46_s18 = int_to_ptr.vmem [resolvable:$true] %s45_s18  ;;  %s4035_s20 = int_to_ptr.vmem [resolvable:$true] %s31_s20 }
   0x6   :  { %s3819_s23 = scalar_lea.hbm %s4526_s4, 512 }
   0x7   :  { %p3820_p0 = scmp.ne.s32.totalorder %s4526_s4, %s3819_s23  ;;  %p3823_p1 = scmp.lt.u32.totalorder %s3819_s23, %s4526_s4 }
   0x9   :  { %p3825_p2 = pnand %p3823_p1, %p3820_p0 }
   0xb   :  { %3828 = shalt.err (!%p3825_p2)
}
   0xc   :  { %s3829_s28 = scalar_lea.vmem %s46_s18, 512  ;;  %p3834_p4 = scmp.lt.s32.totalorder %s46_s18, %s46_s18 }
   0xd   :  { %p3830_p3 = scmp.ne.s32.totalorder %s46_s18, %s3829_s28  ;;  %p3835_p5 = scmp.lt.s32.totalorder %s3829_s28, %s3829_s28 }
   0xf   :  { %p3836_p6 = por %p3835_p5, %p3834_p4 }
  0x11   :  { %p3837_p7 = pnand %p3836_p6, %p3830_p3 }
  0x13   :  { %3840 = shalt.err (!%p3837_p7)
}
  0x14   :  { %s3963_s29 = smov 128   ;;  %s3964_s30 = smov 8  }
  0x15   :  { %51 = dma.hbm_to_vmem [thread:$0]  %s4526_s4, 512, %s46_s18, [#allocation6], %s3963_s29, %s3963_s29, %s3964_s30  }
  0x16   :  { %s3841_s16 = scalar_lea.hbm %s4524_s2, 512 }
  0x17   :  { %p3842_p8 = scmp.ne.s32.totalorder %s4524_s2, %s3841_s16  ;;  %p3845_p9 = scmp.lt.u32.totalorder %s3841_s16, %s4524_s2 }
  0x19   :  { %p3847_p10 = pnand %p3845_p9, %p3842_p8 }
  0x1b   :  { %3850 = shalt.err (!%p3847_p10)
}
  0x1c   :  { %s3851_s23 = scalar_lea.vmem %s4035_s20, 512  ;;  %p3856_p12 = scmp.lt.s32.totalorder %s4035_s20, %s4035_s20 }
  0x1d   :  { %p3852_p11 = scmp.ne.s32.totalorder %s4035_s20, %s3851_s23  ;;  %p3857_p13 = scmp.lt.s32.totalorder %s3851_s23, %s3851_s23 }
  0x1f   :  { %p3858_p0 = por %p3857_p13, %p3856_p12 }
  0x21   :  { %p3859_p1 = pnand %p3858_p0, %p3852_p11 }
  0x23   :  { %3862 = shalt.err (!%p3859_p1)
}
  0x24   :  { %37 = dma.hbm_to_vmem [thread:$0]  %s4524_s2, 512, %s4035_s20, [#allocation3], %s3963_s29, %s3963_s29, %s3964_s30  }
  0x25   :  { %s3965_s24 = smov [#allocation7]   ;;  %s3966_s26 = smov [#allocation8]  }
  0x26   :  { %s57_s25 = sshll.u32 %s3965_s24, 4  ;;  %s73_s27 = sshll.u32 %s3966_s26, 4  ;;  %s58_s25 = int_to_ptr.vmem [resolvable:$true] %s57_s25  ;;  %s4072_s27 = int_to_ptr.vmem [resolvable:$true] %s73_s27 }
  0x27   :  { %s3863_s13 = scalar_lea.hbm %s4527_s5, 512 }
  0x28   :  { %p3864_p2 = scmp.ne.s32.totalorder %s4527_s5, %s3863_s13  ;;  %p3867_p3 = scmp.lt.u32.totalorder %s3863_s13, %s4527_s5 }
  0x2a   :  { %p3869_p4 = pnand %p3867_p3, %p3864_p2 }
  0x2c   :  { %3872 = shalt.err (!%p3869_p4)
}
  0x2d   :  { %s3873_s2 = scalar_lea.vmem %s58_s25, 512  ;;  %p3878_p6 = scmp.lt.s32.totalorder %s58_s25, %s58_s25 }
  0x2e   :  { %p3874_p5 = scmp.ne.s32.totalorder %s58_s25, %s3873_s2  ;;  %p3879_p7 = scmp.lt.s32.totalorder %s3873_s2, %s3873_s2 }
  0x30   :  { %p3880_p8 = por %p3879_p7, %p3878_p6 }
  0x32   :  { %p3881_p9 = pnand %p3880_p8, %p3874_p5 }
  0x34   :  { %3884 = shalt.err (!%p3881_p9)
}
  0x35   :  { %63 = dma.hbm_to_vmem [thread:$0]  %s4527_s5, 512, %s58_s25, [#allocation6], %s3963_s29, %s3963_s29, %s3964_s30  }
  0x36   :  { %s3885_s23 = scalar_lea.hbm %s4530_s8, 512 }
  0x37   :  { %p3886_p10 = scmp.ne.s32.totalorder %s4530_s8, %s3885_s23  ;;  %p3889_p11 = scmp.lt.u32.totalorder %s3885_s23, %s4530_s8 }
  0x39   :  { %p3891_p12 = pnand %p3889_p11, %p3886_p10 }
  0x3b   :  { %3894 = shalt.err (!%p3891_p12)
}
  0x3c   :  { %s3895_s28 = scalar_lea.vmem %s4072_s27, 512  ;;  %p3900_p0 = scmp.lt.s32.totalorder %s4072_s27, %s4072_s27 }
  0x3d   :  { %p3896_p13 = scmp.ne.s32.totalorder %s4072_s27, %s3895_s28  ;;  %p3901_p1 = scmp.lt.s32.totalorder %s3895_s28, %s3895_s28 }
  0x3f   :  { %p3902_p2 = por %p3901_p1, %p3900_p0 }
  0x41   :  { %p3903_p3 = pnand %p3902_p2, %p3896_p13 }
  0x43   :  { %3906 = shalt.err (!%p3903_p3)
}
  0x44   :  { %79 = dma.hbm_to_vmem [thread:$0]  %s4530_s8, 512, %s4072_s27, [#allocation9], %s3963_s29, %s3963_s29, %s3964_s30  }
  0x45   :  { %3951 = dma.done.wait [#allocation3], 512  }
  0x46   :  { %3952 = vsyncadd [#allocation3], 4294966784 }
  0x47   :  { %3953 = dma.done.wait [#allocation6], 1024  }
  0x48   :  { %3954 = vsyncadd [#allocation6], 4294966272 }
  0x49   :  { %3955 = dma.done.wait [#allocation9], 512  }
  0x4a   :  { %3956 = vsyncadd [#allocation9], 4294966784  ;;  %v3967_v0 = vmov 0.0|0.0   ;;  %v3968_v1 = vmov 0.0   ;;  %vm3969_vm0 = vmmov 0   ;;  %vm107_vm1 = vcmask 1043456  }
  0x4b   :  { %3457 = vmatprep.subr.bf16.mxu1 %v3967_v0  ;;  %3166 = vmatprep.subr.mxu0 %v3968_v1  ;;  %vm103_vm2 = vcmask 31744   ;;  %v181_v2 = vld [vmem:[#allocation2] sm:$0xff]  ;;  %v182_v3 = vld [vmem:[#allocation2 + $0x8] sm:$0xff]  ;;  %v95_v4 = vld [vmem:[%s4523_s1] sm:$0xf]  ;;  %s3970_s12 = smov 64  }
  0x4c   :  { %3168 = vmatprep.mubr.msk.f32.mxu0 %vm3969_vm0, %v3968_v1  ;;  %3179 = vmatprep.mubr.msk.f32.mxu1 %vm3969_vm0, %v3968_v1  ;;  %v4118_v5 = vpack.c.bf16 %v182_v3, %v181_v2  ;;  %v94_v6 = vld [vmem:[%s4522_s0] sm:$0xff]  ;;  %v183_v7 = vld [vmem:[#allocation2 + $0x10] sm:$0xff]  ;;  %vm185_vm3 = vcmask 261120   ;;  %vm1032_vm4 = vcmask 1040384   ;;  %vm1034_vm5 = vcmask 1041408   ;;  %s3973_s23 = smov [#allocation11]  }
  0x4d   :  { %3167 = vmatpush3.msk.msra.mxu0 %vm107_vm1, %v95_v4  ;;  %v184_v8 = vld [vmem:[#allocation2 + $0x18] sm:$0xff]  ;;  %vm1036_vm6 = vcmask 1042432   ;;  %vm1039_vm7 = vcmask 1044480   ;;  %vm1041_vm8 = vcmask 1045504   ;;  %vm1043_vm9 = vcmask 1046528   ;;  %s2967_s4 = sshll.u32 %s3973_s23, 4  ;;  %s2968_s4 = int_to_ptr.vmem [resolvable:$true] %s2967_s4 }
  0x4e   :  { %3169 = vmatmul.mubr.msk.f32.vlgmr.msra.gmra.mrb[0].mxu0 %vm103_vm2, %v94_v6  ;;  %3463 = vmatprep.subr.bf16.mxu0 %v3967_v0  ;;  %v4126_v9 = vpack.c.bf16 %v184_v8, %v183_v7  ;;  %v2982_v12 = vld [vmem:[%s4525_s3] ss:$0 sm:$0xff]  ;;  %s3971_s3 = smov 32   ;;  %vm2933_vm10 = vcmask 256000   ;;  %s3907_s18 = scalar_lea.vmem %s2968_s4, 64 }
  0x4f   :  { %3459 = vmatpush3.bf16.msra.mxu1 %v4118_v5  ;;  %3465 = vmatpush3.bf16.msra.mxu0 %v4118_v5  ;;  %p3908_p4 = scmp.ne.s32.totalorder %s2968_s4, %s3907_s18  ;;  %p3912_p5 = scmp.lt.s32.totalorder %s2968_s4, %s2968_s4 }
  0x50   :  { %3460 = vmatprep.subr.bf16.mxu1 %v3967_v0  ;;  %3466 = vmatprep.subr.bf16.mxu0 %v3967_v0  ;;  %p3913_p6 = scmp.lt.s32.totalorder %s3907_s18, %s3907_s18 }
  0x51   :  { %3190 = vmatprep.mubr.msk.f32.mxu0 %vm3969_vm0, %v3968_v1 }
  0x52   :  { %p3914_p7 = por %p3913_p6, %p3912_p5 }
  0x53   :  { %3462 = vmatpush3.bf16.msra.mxu1 %v4126_v9  ;;  %3468 = vmatpush3.bf16.msra.mxu0 %v4126_v9 }
  0x54   :  { %3469 = vmatprep.subr.bf16.mxu1 %v3967_v0  ;;  %3475 = vmatprep.subr.bf16.mxu0 %v3967_v0  ;;  %p3915_p8 = pnand %p3914_p7, %p3908_p4 }
  0x56   :  { %3180 = vmatmul.mubr.f32.vlgmr.msra.gmra.mrb[0].mxu1 %v3968_v1 }
  0x57   :  { %3471 = vmatpush3.bf16.msra.mxu1 %v4118_v5  ;;  %3201 = vmatprep.mubr.msk.f32.mxu1 %vm3969_vm0, %v3968_v1 }
  0x58   :  { %3472 = vmatprep.subr.bf16.mxu1 %v3967_v0 }
  0x5b   :  { %3474 = vmatpush3.bf16.msra.mxu1 %v4126_v9 }
  0x5c   :  { %3481 = vmatprep.subr.bf16.mxu1 %v3967_v0 }
 0x121   :  { %v177_v10 = vpop.f32.mrb[0].mxu0 }
 0x122   :  { %v3170_v11 = vpop.f32.mrb[1].mxu0  ;;  %v4147_v13 = vadd.f32 %v2982_v12, %v177_v10 }
 0x129   :  { %v255_v14 = vpop.f32.mrb[0].mxu1 }
 0x12a   :  { %v259_v15 = vadd.f32 %v255_v14, %v4147_v13  ;;  %v3181_v16 = vpop.f32.mrb[1].mxu1 }
 0x12c   :  { %3627 = vtanh.f32 %v259_v15  ;;  %v2985_v18 = vmul.f32 -1.442695, %v259_v15 }
 0x12e   :  { %3629 = vpow2.f32 %v2985_v18 }
 0x136   :  { %v3628_v17 = vpop.eup %3627 }
 0x137   :  { %269 = vrot.lane.b32.xlu0 %v3628_v17, %s3970_s12 }
 0x138   :  { %v3630_v19 = vpop.eup %3629 }
 0x139   :  { %v263_v20 = vadd.f32 1.0, %v3630_v19 }
 0x13b   :  { %3631 = vrcp.f32 %v263_v20 }
 0x145   :  { %v3632_v21 = vpop.eup %3631 }
 0x146   :  { %v267_v24 = vmul.f32 0.0, %v3632_v21 }
 0x1a9   :  { %v270_v22 = vpop.permute.xlu0 %269 }
 0x1aa   :  { %v272_v23 = vmul.f32 %v3632_v21, %v270_v22 }
 0x1ac   :  { %274 = vrot.lane.b32.xlu0 %v272_v23, %s3971_s3 }
 0x21e   :  { %v275_v25 = vpop.permute.xlu0 %274 }
 0x21f   :  { %v277_v26 = vadd.f32 %v275_v25, %v267_v24 }
 0x221   :  { %3633 = vtanh.f32 %v277_v26  ;;  %v371_v42 = vrot.slane %v277_v26, 7 }
 0x22b   :  { %v3634_v27 = vpop.eup %3633 }
 0x22c   :  { %280 = vrot.lane.b32.xlu1 %v3634_v27, %s3970_s12 }
 0x29e   :  { %v281_v28 = vpop.permute.xlu1 %280 }
 0x29f   :  { %v4153_v29 = vmul.f32 %v3632_v21, %v281_v28 }
 0x2a1   :  { %285 = vrot.lane.b32.xlu1 %v4153_v29, %s3971_s3 }
 0x313   :  { %v286_v30 = vpop.permute.xlu1 %285 }
 0x314   :  { %3191 = vmatmul.mubr.msk.f32.vlgmr.msra.gmra.mrb[2].mxu0 %vm185_vm3, %v286_v30 }
 0x315   :  { %3477 = vmatpush3.bf16.msra.mxu0 %v4118_v5  ;;  %3212 = vmatprep.mubr.msk.f32.mxu0 %vm3969_vm0, %v3968_v1 }
 0x316   :  { %3478 = vmatprep.subr.bf16.mxu0 %v3967_v0 }
 0x319   :  { %3480 = vmatpush3.bf16.msra.mxu0 %v4126_v9 }
 0x31a   :  { %3487 = vmatprep.subr.bf16.mxu0 %v3967_v0 }
 0x3e7   :  { %v355_v31 = vpop.f32.mrb[2].mxu0 }
 0x3e8   :  { %v360_v32 = vrot.slane %v355_v31, 7  ;;  %v3192_v33 = vpop.f32.mrb[3].mxu0 }
 0x3ea   :  { %v362_v34 = vadd.f32 %v360_v32, %v4147_v13 }
 0x3ec   :  { %3635 = vtanh.f32 %v362_v34  ;;  %v2987_v36 = vmul.f32 -1.442695, %v362_v34 }
 0x3ee   :  { %3637 = vpow2.f32 %v2987_v36 }
 0x3f6   :  { %v3636_v35 = vpop.eup %3635 }
 0x3f7   :  { %375 = vrot.lane.b32.xlu0 %v3636_v35, %s3970_s12 }
 0x3f8   :  { %v3638_v37 = vpop.eup %3637 }
 0x3f9   :  { %v366_v38 = vadd.f32 1.0, %v3638_v37 }
 0x3fb   :  { %3639 = vrcp.f32 %v366_v38 }
 0x405   :  { %v3640_v39 = vpop.eup %3639 }
 0x406   :  { %v373_v43 = vmul.f32 %v3640_v39, %v371_v42 }
 0x469   :  { %v376_v40 = vpop.permute.xlu0 %375 }
 0x46a   :  { %v378_v41 = vmul.f32 %v3640_v39, %v376_v40 }
 0x46c   :  { %380 = vrot.lane.b32.xlu1 %v378_v41, %s3971_s3 }
 0x4de   :  { %v381_v44 = vpop.permute.xlu1 %380 }
 0x4df   :  { %v383_v45 = vadd.f32 %v381_v44, %v373_v43 }
 0x4e1   :  { %3641 = vtanh.f32 %v383_v45  ;;  %v478_v62 = vrot.slane %v383_v45, 7 }
 0x4eb   :  { %v3642_v46 = vpop.eup %3641 }
 0x4ec   :  { %386 = vrot.lane.b32.xlu0 %v3642_v46, %s3970_s12 }
 0x55e   :  { %v387_v47 = vpop.permute.xlu0 %386 }
 0x55f   :  { %v389_v48 = vmul.f32 %v3640_v39, %v387_v47 }
 0x561   :  { %v391_v49 = vrot.slane %v389_v48, 1  ;;  %v1033_v8 = vsel %vm1032_vm4, %v4153_v29, %v389_v48 }
 0x563   :  { %392 = vrot.lane.b32.xlu1 %v391_v49, %s3971_s3 }
 0x5d5   :  { %v393_v50 = vpop.permute.xlu1 %392 }
 0x5d6   :  { %3202 = vmatmul.mubr.msk.f32.vlgmr.msra.gmra.mrb[2].mxu1 %vm185_vm3, %v393_v50 }
 0x5d7   :  { %3483 = vmatpush3.bf16.msra.mxu1 %v4118_v5  ;;  %3223 = vmatprep.mubr.msk.f32.mxu1 %vm3969_vm0, %v3968_v1 }
 0x5d8   :  { %3484 = vmatprep.subr.bf16.mxu1 %v3967_v0 }
 0x5db   :  { %3486 = vmatpush3.bf16.msra.mxu1 %v4126_v9 }
 0x5dc   :  { %3493 = vmatprep.subr.bf16.mxu1 %v3967_v0 }
 0x6a9   :  { %v462_v51 = vpop.f32.mrb[2].mxu1 }
 0x6aa   :  { %v467_v52 = vrot.slane %v462_v51, 6  ;;  %v3203_v53 = vpop.f32.mrb[3].mxu1 }
 0x6ac   :  { %v469_v54 = vadd.f32 %v467_v52, %v4147_v13 }
 0x6ae   :  { %3643 = vtanh.f32 %v469_v54  ;;  %v2989_v56 = vmul.f32 -1.442695, %v469_v54 }
 0x6b0   :  { %3645 = vpow2.f32 %v2989_v56 }
 0x6b8   :  { %v3644_v55 = vpop.eup %3643 }
 0x6b9   :  { %482 = vrot.lane.b32.xlu0 %v3644_v55, %s3970_s12 }
 0x6ba   :  { %v3646_v57 = vpop.eup %3645 }
 0x6bb   :  { %v473_v58 = vadd.f32 1.0, %v3646_v57 }
 0x6bd   :  { %3647 = vrcp.f32 %v473_v58 }
 0x6c7   :  { %v3648_v59 = vpop.eup %3647 }
 0x6c8   :  { %v480_v63 = vmul.f32 %v3648_v59, %v478_v62 }
 0x72b   :  { %v483_v60 = vpop.permute.xlu0 %482 }
 0x72c   :  { %v485_v61 = vmul.f32 %v3648_v59, %v483_v60 }
 0x72e   :  { %487 = vrot.lane.b32.xlu1 %v485_v61, %s3971_s3 }
 0x7a0   :  { %v488_v2 = vpop.permute.xlu1 %487 }
 0x7a1   :  { %v490_v3 = vadd.f32 %v488_v2, %v480_v63 }
 0x7a3   :  { %3649 = vtanh.f32 %v490_v3  ;;  %v585_v25 = vrot.slane %v490_v3, 7 }
 0x7ad   :  { %v3650_v4 = vpop.eup %3649 }
 0x7ae   :  { %493 = vrot.lane.b32.xlu0 %v3650_v4, %s3970_s12 }
 0x820   :  { %v494_v6 = vpop.permute.xlu0 %493 }
 0x821   :  { %v496_v7 = vmul.f32 %v3648_v59, %v494_v6 }
 0x823   :  { %v498_v10 = vrot.slane %v496_v7, 2  ;;  %v1035_v11 = vsel %vm1034_vm5, %v1033_v8, %v496_v7 }
 0x825   :  { %499 = vrot.lane.b32.xlu1 %v498_v10, %s3971_s3 }
 0x897   :  { %v500_v12 = vpop.permute.xlu1 %499 }
 0x898   :  { %3213 = vmatmul.mubr.msk.f32.vlgmr.msra.gmra.mrb[4].mxu0 %vm185_vm3, %v500_v12 }
 0x899   :  { %3489 = vmatpush3.bf16.msra.mxu0 %v4118_v5  ;;  %3234 = vmatprep.mubr.msk.f32.mxu0 %vm3969_vm0, %v3968_v1 }
 0x89a   :  { %3490 = vmatprep.subr.bf16.mxu0 %v3967_v0 }
 0x89d   :  { %3492 = vmatpush3.bf16.msra.mxu0 %v4126_v9 }
 0x89e   :  { %3499 = vmatprep.subr.bf16.mxu0 %v3967_v0 }
 0x96b   :  { %v569_v14 = vpop.f32.mrb[4].mxu0 }
 0x96c   :  { %v574_v15 = vrot.slane %v569_v14, 5  ;;  %v3214_v16 = vpop.f32.mrb[5].mxu0 }
 0x96e   :  { %v576_v17 = vadd.f32 %v574_v15, %v4147_v13 }
 0x970   :  { %3651 = vtanh.f32 %v576_v17  ;;  %v2991_v19 = vmul.f32 -1.442695, %v576_v17 }
 0x972   :  { %3653 = vpow2.f32 %v2991_v19 }
 0x97a   :  { %v3652_v18 = vpop.eup %3651 }
 0x97b   :  { %589 = vrot.lane.b32.xlu0 %v3652_v18, %s3970_s12 }
 0x97c   :  { %v3654_v20 = vpop.eup %3653 }
 0x97d   :  { %v580_v21 = vadd.f32 1.0, %v3654_v20 }
 0x97f   :  { %3655 = vrcp.f32 %v580_v21 }
 0x989   :  { %v3656_v22 = vpop.eup %3655 }
 0x98a   :  { %v587_v26 = vmul.f32 %v3656_v22, %v585_v25 }
 0x9ed   :  { %v590_v23 = vpop.permute.xlu0 %589 }
 0x9ee   :  { %v592_v24 = vmul.f32 %v3656_v22, %v590_v23 }
 0x9f0   :  { %594 = vrot.lane.b32.xlu1 %v592_v24, %s3971_s3 }
 0xa62   :  { %v595_v27 = vpop.permute.xlu1 %594 }
 0xa63   :  { %v597_v28 = vadd.f32 %v595_v27, %v587_v26 }
 0xa65   :  { %3657 = vtanh.f32 %v597_v28  ;;  %v692_v46 = vrot.slane %v597_v28, 7 }
 0xa6f   :  { %v3658_v29 = vpop.eup %3657 }
 0xa70   :  { %600 = vrot.lane.b32.xlu0 %v3658_v29, %s3970_s12 }
 0xae2   :  { %v601_v30 = vpop.permute.xlu0 %600 }
 0xae3   :  { %v603_v31 = vmul.f32 %v3656_v22, %v601_v30 }
 0xae5   :  { %v605_v32 = vrot.slane %v603_v31, 3  ;;  %v1037_v33 = vsel %vm1036_vm6, %v1035_v11, %v603_v31 }
 0xae7   :  { %606 = vrot.lane.b32.xlu1 %v605_v32, %s3971_s3 }
 0xb59   :  { %v607_v34 = vpop.permute.xlu1 %606 }
 0xb5a   :  { %3224 = vmatmul.mubr.msk.f32.vlgmr.msra.gmra.mrb[4].mxu1 %vm185_vm3, %v607_v34 }
 0xb5b   :  { %3495 = vmatpush3.bf16.msra.mxu1 %v4118_v5  ;;  %3245 = vmatprep.mubr.msk.f32.mxu1 %vm3969_vm0, %v3968_v1 }
 0xb5c   :  { %3496 = vmatprep.subr.bf16.mxu1 %v3967_v0 }
 0xb5f   :  { %3498 = vmatpush3.bf16.msra.mxu1 %v4126_v9 }
 0xb60   :  { %3505 = vmatprep.subr.bf16.mxu1 %v3967_v0 }
 0xc2d   :  { %v676_v35 = vpop.f32.mrb[4].mxu1 }
 0xc2e   :  { %v681_v36 = vrot.slane %v676_v35, 4  ;;  %v3225_v37 = vpop.f32.mrb[5].mxu1 }
 0xc30   :  { %v683_v38 = vadd.f32 %v681_v36, %v4147_v13 }
 0xc32   :  { %3659 = vtanh.f32 %v683_v38  ;;  %v2993_v40 = vmul.f32 -1.442695, %v683_v38 }
 0xc34   :  { %3661 = vpow2.f32 %v2993_v40 }
 0xc3c   :  { %v3660_v39 = vpop.eup %3659 }
 0xc3d   :  { %696 = vrot.lane.b32.xlu0 %v3660_v39, %s3970_s12 }
 0xc3e   :  { %v3662_v41 = vpop.eup %3661 }
 0xc3f   :  { %v687_v42 = vadd.f32 1.0, %v3662_v41 }
 0xc41   :  { %3663 = vrcp.f32 %v687_v42 }
 0xc4b   :  { %v3664_v43 = vpop.eup %3663 }
 0xc4c   :  { %v694_v47 = vmul.f32 %v3664_v43, %v692_v46 }
 0xcaf   :  { %v697_v44 = vpop.permute.xlu0 %696 }
 0xcb0   :  { %v699_v45 = vmul.f32 %v3664_v43, %v697_v44 }
 0xcb2   :  { %701 = vrot.lane.b32.xlu1 %v699_v45, %s3971_s3 }
 0xd24   :  { %v702_v48 = vpop.permute.xlu1 %701 }
 0xd25   :  { %v704_v49 = vadd.f32 %v702_v48, %v694_v47 }
 0xd27   :  { %3665 = vtanh.f32 %v704_v49 }
 0xd31   :  { %v3666_v50 = vpop.eup %3665 }
 0xd32   :  { %707 = vrot.lane.b32.xlu0 %v3666_v50, %s3970_s12 }
 0xda4   :  { %v708_v51 = vpop.permute.xlu0 %707 }
 0xda5   :  { %v710_v52 = vmul.f32 %v3664_v43, %v708_v51 }
 0xda7   :  { %v712_v53 = vrot.slane %v710_v52, 4  ;;  %v1038_v54 = vsel %vm107_vm1, %v1037_v33, %v710_v52  ;;  %v1046_v52 = vld [vmem:[#allocation5 + $0x8] sm:$0xff] }
 0xda9   :  { %713 = vrot.lane.b32.xlu1 %v712_v53, %s3971_s3  ;;  %v1131_v53 = vld [vmem:[#allocation7] sm:$0xff] }
 0xe1b   :  { %v714_v55 = vpop.permute.xlu1 %713 }
 0xe1c   :  { %3235 = vmatmul.mubr.msk.f32.vlgmr.msra.gmra.mrb[6].mxu0 %vm185_vm3, %v714_v55  ;;  %v1132_v55 = vld [vmem:[#allocation7 + $0x8] sm:$0xff] }
 0xe1d   :  { %3501 = vmatpush3.bf16.msra.mxu0 %v4118_v5  ;;  %3256 = vmatprep.mubr.msk.f32.mxu0 %vm3969_vm0, %v3968_v1 }
 0xe1e   :  { %3502 = vmatprep.subr.bf16.mxu0 %v3967_v0 }
 0xe21   :  { %3504 = vmatpush3.bf16.msra.mxu0 %v4126_v9  ;;  %v799_v9 = vrot.slane %v704_v49, 7 }
 0xe22   :  { %3511 = vmatprep.subr.bf16.mxu0 %v3967_v0 }
 0xeef   :  { %v783_v56 = vpop.f32.mrb[6].mxu0 }
 0xef0   :  { %v788_v57 = vrot.slane %v783_v56, 3  ;;  %v3236_v58 = vpop.f32.mrb[7].mxu0  ;;  %v1047_v56 = vld [vmem:[#allocation5 + $0x10] sm:$0xff] }
 0xef1   :  { %v4241_v58 = vpack.c.bf16 %v1132_v55, %v1131_v53 }
 0xef2   :  { %v790_v59 = vadd.f32 %v788_v57, %v4147_v13  ;;  %v1048_v57 = vld [vmem:[#allocation5 + $0x18] sm:$0xff] }
 0xef4   :  { %3667 = vtanh.f32 %v790_v59  ;;  %v2995_v61 = vmul.f32 -1.442695, %v790_v59  ;;  %v1133_v59 = vld [vmem:[#allocation7 + $0x10] sm:$0xff] }
 0xef6   :  { %3669 = vpow2.f32 %v2995_v61  ;;  %v3509_v61 = vpack.c.bf16 %v1048_v57, %v1047_v56 }
 0xefe   :  { %v3668_v60 = vpop.eup %3667 }
 0xeff   :  { %803 = vrot.lane.b32.xlu0 %v3668_v60, %s3970_s12  ;;  %v1134_v60 = vld [vmem:[#allocation7 + $0x18] sm:$0xff] }
 0xf00   :  { %v3670_v5 = vpop.eup %3669 }
 0xf01   :  { %v794_v62 = vadd.f32 1.0, %v3670_v5  ;;  %v4245_v5 = vpack.c.bf16 %v1134_v60, %v1133_v59 }
 0xf03   :  { %3671 = vrcp.f32 %v794_v62 }
 0xf0d   :  { %v3672_v63 = vpop.eup %3671 }
 0xf0e   :  { %v801_v4 = vmul.f32 %v3672_v63, %v799_v9 }
 0xf71   :  { %v804_v2 = vpop.permute.xlu0 %803 }
 0xf72   :  { %v806_v3 = vmul.f32 %v3672_v63, %v804_v2 }
 0xf74   :  { %808 = vrot.lane.b32.xlu1 %v806_v3, %s3971_s3 }
 0xfe6   :  { %v809_v6 = vpop.permute.xlu1 %808 }
 0xfe7   :  { %v811_v7 = vadd.f32 %v809_v6, %v801_v4 }
 0xfe9   :  { %3673 = vtanh.f32 %v811_v7  ;;  %v906_v27 = vrot.slane %v811_v7, 7  ;;  %v3000_v7 = vld [vmem:[%s4528_s6] ss:$0 sm:$0xff] }
 0xff3   :  { %v3674_v8 = vpop.eup %3673 }
 0xff4   :  { %814 = vrot.lane.b32.xlu0 %v3674_v8, %s3970_s12 }
0x1066   :  { %v815_v10 = vpop.permute.xlu0 %814 }
0x1067   :  { %v817_v11 = vmul.f32 %v3672_v63, %v815_v10 }
0x1069   :  { %v819_v12 = vrot.slane %v817_v11, 5  ;;  %v1040_v14 = vsel %vm1039_vm7, %v1038_v54, %v817_v11 }
0x106b   :  { %820 = vrot.lane.b32.xlu1 %v819_v12, %s3971_s3 }
0x10dd   :  { %v821_v15 = vpop.permute.xlu1 %820 }
0x10de   :  { %3246 = vmatmul.mubr.msk.f32.vlgmr.msra.gmra.mrb[6].mxu1 %vm185_vm3, %v821_v15 }
0x10df   :  { %3267 = vmatprep.mubr.msk.f32.mxu1 %vm3969_vm0, %v3968_v1 }
0x11b1   :  { %v890_v16 = vpop.f32.mrb[6].mxu1 }
0x11b2   :  { %v895_v17 = vrot.slane %v890_v16, 2  ;;  %v3247_v18 = vpop.f32.mrb[7].mxu1 }
0x11b4   :  { %v897_v19 = vadd.f32 %v895_v17, %v4147_v13 }
0x11b6   :  { %3675 = vtanh.f32 %v897_v19  ;;  %v2997_v21 = vmul.f32 -1.442695, %v897_v19 }
0x11b8   :  { %3677 = vpow2.f32 %v2997_v21 }
0x11c0   :  { %v3676_v20 = vpop.eup %3675 }
0x11c1   :  { %910 = vrot.lane.b32.xlu0 %v3676_v20, %s3970_s12 }
0x11c2   :  { %v3678_v22 = vpop.eup %3677 }
0x11c3   :  { %v901_v23 = vadd.f32 1.0, %v3678_v22 }
0x11c5   :  { %3679 = vrcp.f32 %v901_v23 }
0x11cf   :  { %v3680_v24 = vpop.eup %3679 }
0x11d0   :  { %v908_v28 = vmul.f32 %v3680_v24, %v906_v27 }
0x1233   :  { %v911_v25 = vpop.permute.xlu0 %910 }
0x1234   :  { %v913_v26 = vmul.f32 %v3680_v24, %v911_v25 }
0x1236   :  { %915 = vrot.lane.b32.xlu1 %v913_v26, %s3971_s3 }
0x12a8   :  { %v916_v29 = vpop.permute.xlu1 %915 }
0x12a9   :  { %v918_v30 = vadd.f32 %v916_v29, %v908_v28 }
0x12ab   :  { %3681 = vtanh.f32 %v918_v30  ;;  %v1013_v48 = vrot.slane %v918_v30, 7 }
0x12b5   :  { %v3682_v31 = vpop.eup %3681 }
0x12b6   :  { %921 = vrot.lane.b32.xlu0 %v3682_v31, %s3970_s12 }
0x1328   :  { %v922_v32 = vpop.permute.xlu0 %921 }
0x1329   :  { %v924_v33 = vmul.f32 %v3680_v24, %v922_v32 }
0x132b   :  { %v926_v34 = vrot.slane %v924_v33, 6  ;;  %v1042_v35 = vsel %vm1041_vm8, %v1040_v14, %v924_v33 }
0x132d   :  { %927 = vrot.lane.b32.xlu1 %v926_v34, %s3971_s3 }
0x139f   :  { %v928_v36 = vpop.permute.xlu1 %927 }
0x13a0   :  { %3257 = vmatmul.mubr.msk.f32.vlgmr.msra.gmra.mrb[8].mxu0 %vm185_vm3, %v928_v36 }
0x13a1   :  { %3278 = vmatprep.mubr.msk.f32.mxu0 %vm3969_vm0, %v3968_v1  ;;  %3513 = vmatpush3.bf16.msra.mxu0 %v4241_v58 }
0x13a2   :  { %3514 = vmatprep.subr.bf16.mxu0 %v3967_v0 }
0x13a5   :  { %3516 = vmatpush3.bf16.msra.mxu0 %v4245_v5 }
0x13a6   :  { %3523 = vmatprep.subr.bf16.mxu0 %v3967_v0 }
0x13a8   :  { %3279 = vmatmul.mubr.f32.vlgmr.msra.gmra.mrb[10].mxu0 %v3968_v1 }
0x13a9   :  { %3525 = vmatpush3.bf16.msra.mxu0 %v4241_v58  ;;  %3300 = vmatprep.mubr.msk.f32.mxu0 %vm3969_vm0, %v3968_v1 }
0x13aa   :  { %3526 = vmatprep.subr.bf16.mxu0 %v3967_v0 }
0x13ad   :  { %3528 = vmatpush3.bf16.msra.mxu0 %v4245_v5 }
0x13ae   :  { %3535 = vmatprep.subr.bf16.mxu0 %v3967_v0 }
0x1473   :  { %v997_v37 = vpop.f32.mrb[8].mxu0 }
0x1474   :  { %v1002_v38 = vrot.slane %v997_v37, 1  ;;  %v3258_v39 = vpop.f32.mrb[9].mxu0 }
0x1476   :  { %v1004_v40 = vadd.f32 %v1002_v38, %v4147_v13  ;;  %v1045_v13 = vld [vmem:[#allocation5] sm:$0xff] }
0x1477   :  { %v3506_v54 = vpack.c.bf16 %v1046_v52, %v1045_v13 }
0x1478   :  { %3683 = vtanh.f32 %v1004_v40  ;;  %v2999_v42 = vmul.f32 -1.442695, %v1004_v40 }
0x1479   :  { %3507 = vmatpush3.bf16.msra.mxu1 %v3506_v54 }
0x147a   :  { %3685 = vpow2.f32 %v2999_v42  ;;  %3508 = vmatprep.subr.bf16.mxu1 %v3967_v0 }
0x147b   :  { %v1201_v4 = vpop.f32.mrb[10].mxu0 }
0x147c   :  { %v3280_v6 = vpop.f32.mrb[11].mxu0 }
0x147d   :  { %3510 = vmatpush3.bf16.msra.mxu1 %v3509_v61 }
0x147e   :  { %3517 = vmatprep.subr.bf16.mxu1 %v3967_v0 }
0x1482   :  { %v3684_v41 = vpop.eup %3683 }
0x1483   :  { %1017 = vrot.lane.b32.xlu0 %v3684_v41, %s3970_s12 }
0x1484   :  { %v3686_v43 = vpop.eup %3685 }
0x1485   :  { %v1008_v44 = vadd.f32 1.0, %v3686_v43 }
0x1487   :  { %3687 = vrcp.f32 %v1008_v44 }
0x1491   :  { %v3688_v45 = vpop.eup %3687 }
0x1492   :  { %v1015_v49 = vmul.f32 %v3688_v45, %v1013_v48 }
0x14f5   :  { %v1018_v46 = vpop.permute.xlu0 %1017 }
0x14f6   :  { %v1020_v47 = vmul.f32 %v3688_v45, %v1018_v46 }
0x14f8   :  { %1022 = vrot.lane.b32.xlu1 %v1020_v47, %s3971_s3 }
0x156a   :  { %v1023_v50 = vpop.permute.xlu1 %1022 }
0x156b   :  { %v4238_v51 = vadd.f32 %v1023_v50, %v1015_v49 }
0x156d   :  { %3689 = vtanh.f32 %v4238_v51 }
0x1577   :  { %v3690_v62 = vpop.eup %3689 }
0x1578   :  { %1028 = vrot.lane.b32.xlu0 %v3690_v62, %s3970_s12 }
0x15ea   :  { %v1029_v63 = vpop.permute.xlu0 %1028 }
0x15eb   :  { %v4259_v2 = vmul.f32 %v3688_v45, %v1029_v63 }
0x15ed   :  { %v1044_v3 = vsel %vm1043_vm9, %v1042_v35, %v4259_v2 }
0x15ee   :  { %1057 = vrot.lane.b32.xlu1 %v1044_v3, %s3971_s3 }
0x1660   :  { %v1058_v9 = vpop.permute.xlu1 %1057 }
0x1661   :  { %3268 = vmatmul.mubr.msk.f32.vlgmr.msra.gmra.mrb[8].mxu1 %vm185_vm3, %v1058_v9 }
0x1662   :  { %3519 = vmatpush3.bf16.msra.mxu1 %v4241_v58  ;;  %3289 = vmatprep.mubr.msk.f32.mxu1 %vm3969_vm0, %v3968_v1 }
0x1663   :  { %3520 = vmatprep.subr.bf16.mxu1 %v3967_v0 }
0x1666   :  { %3522 = vmatpush3.bf16.msra.mxu1 %v4245_v5 }
0x1667   :  { %3529 = vmatprep.subr.bf16.mxu1 %v3967_v0 }
0x1734   :  { %v1127_v8 = vpop.f32.mrb[8].mxu1 }
0x1735   :  { %v4274_v10 = vadd.f32 %v3000_v7, %v1127_v8  ;;  %v3269_v11 = vpop.f32.mrb[9].mxu1 }
0x1737   :  { %v1205_v12 = vadd.f32 %v1201_v4, %v4274_v10 }
0x1739   :  { %3691 = vtanh.f32 %v1205_v12  ;;  %v3002_v15 = vmul.f32 -1.442695, %v1205_v12 }
0x173b   :  { %3693 = vpow2.f32 %v3002_v15 }
0x1743   :  { %v3692_v14 = vpop.eup %3691 }
0x1744   :  { %1215 = vrot.lane.b32.xlu0 %v3692_v14, %s3970_s12 }
0x1745   :  { %v3694_v16 = vpop.eup %3693 }
0x1746   :  { %v1209_v17 = vadd.f32 1.0, %v3694_v16 }
0x1748   :  { %3695 = vrcp.f32 %v1209_v17 }
0x1752   :  { %v3696_v18 = vpop.eup %3695 }
0x1753   :  { %v1213_v21 = vmul.f32 0.0, %v3696_v18 }
0x17b6   :  { %v1216_v19 = vpop.permute.xlu0 %1215 }
0x17b7   :  { %v1218_v20 = vmul.f32 %v3696_v18, %v1216_v19 }
0x17b9   :  { %1220 = vrot.lane.b32.xlu1 %v1218_v20, %s3971_s3 }
0x182b   :  { %v1221_v22 = vpop.permute.xlu1 %1220 }
0x182c   :  { %v1223_v23 = vadd.f32 %v1221_v22, %v1213_v21 }
0x182e   :  { %3697 = vtanh.f32 %v1223_v23  ;;  %v1317_v39 = vrot.slane %v1223_v23, 7 }
0x1838   :  { %v3698_v24 = vpop.eup %3697 }
0x1839   :  { %1226 = vrot.lane.b32.xlu0 %v3698_v24, %s3970_s12 }
0x18ab   :  { %v1227_v25 = vpop.permute.xlu0 %1226 }
0x18ac   :  { %v4280_v26 = vmul.f32 %v3696_v18, %v1227_v25 }
0x18ae   :  { %1231 = vrot.lane.b32.xlu1 %v4280_v26, %s3971_s3 }
0x1920   :  { %v1232_v27 = vpop.permute.xlu1 %1231 }
0x1921   :  { %3290 = vmatmul.mubr.msk.f32.vlgmr.msra.gmra.mrb[10].mxu1 %vm185_vm3, %v1232_v27 }
0x1922   :  { %3531 = vmatpush3.bf16.msra.mxu1 %v4241_v58  ;;  %3311 = vmatprep.mubr.msk.f32.mxu1 %vm3969_vm0, %v3968_v1 }
0x1923   :  { %3532 = vmatprep.subr.bf16.mxu1 %v3967_v0 }
0x1926   :  { %3534 = vmatpush3.bf16.msra.mxu1 %v4245_v5 }
0x1927   :  { %3541 = vmatprep.subr.bf16.mxu1 %v3967_v0 }
0x19f4   :  { %v1301_v28 = vpop.f32.mrb[10].mxu1 }
0x19f5   :  { %v1306_v29 = vrot.slane %v1301_v28, 7  ;;  %v3291_v30 = vpop.f32.mrb[11].mxu1 }
0x19f7   :  { %v1308_v31 = vadd.f32 %v1306_v29, %v4274_v10 }
0x19f9   :  { %3699 = vtanh.f32 %v1308_v31  ;;  %v3004_v33 = vmul.f32 -1.442695, %v1308_v31 }
0x19fb   :  { %3701 = vpow2.f32 %v3004_v33 }
0x1a03   :  { %v3700_v32 = vpop.eup %3699 }
0x1a04   :  { %1321 = vrot.lane.b32.xlu0 %v3700_v32, %s3970_s12 }
0x1a05   :  { %v3702_v34 = vpop.eup %3701 }
0x1a06   :  { %v1312_v35 = vadd.f32 1.0, %v3702_v34 }
0x1a08   :  { %3703 = vrcp.f32 %v1312_v35 }
0x1a12   :  { %v3704_v36 = vpop.eup %3703 }
0x1a13   :  { %v1319_v40 = vmul.f32 %v3704_v36, %v1317_v39 }
0x1a76   :  { %v1322_v37 = vpop.permute.xlu0 %1321 }
0x1a77   :  { %v1324_v38 = vmul.f32 %v3704_v36, %v1322_v37 }
0x1a79   :  { %1326 = vrot.lane.b32.xlu1 %v1324_v38, %s3971_s3 }
0x1aeb   :  { %v1327_v41 = vpop.permute.xlu1 %1326 }
0x1aec   :  { %v1329_v42 = vadd.f32 %v1327_v41, %v1319_v40 }
0x1aee   :  { %3705 = vtanh.f32 %v1329_v42  ;;  %v1424_v60 = vrot.slane %v1329_v42, 7 }
0x1af8   :  { %v3706_v43 = vpop.eup %3705 }
0x1af9   :  { %1332 = vrot.lane.b32.xlu0 %v3706_v43, %s3970_s12 }
0x1b6b   :  { %v1333_v44 = vpop.permute.xlu0 %1332 }
0x1b6c   :  { %v1335_v45 = vmul.f32 %v3704_v36, %v1333_v44 }
0x1b6e   :  { %v1337_v46 = vrot.slane %v1335_v45, 1  ;;  %v1978_v6 = vsel %vm1032_vm4, %v4280_v26, %v1335_v45 }
0x1b70   :  { %1338 = vrot.lane.b32.xlu1 %v1337_v46, %s3971_s3 }
0x1be2   :  { %v1339_v47 = vpop.permute.xlu1 %1338 }
0x1be3   :  { %3301 = vmatmul.mubr.msk.f32.vlgmr.msra.gmra.mrb[12].mxu0 %vm185_vm3, %v1339_v47 }
0x1be4   :  { %3537 = vmatpush3.bf16.msra.mxu0 %v4241_v58  ;;  %3322 = vmatprep.mubr.msk.f32.mxu0 %vm3969_vm0, %v3968_v1 }
0x1be5   :  { %3538 = vmatprep.subr.bf16.mxu0 %v3967_v0 }
0x1be8   :  { %3540 = vmatpush3.bf16.msra.mxu0 %v4245_v5 }
0x1be9   :  { %3547 = vmatprep.subr.bf16.mxu0 %v3967_v0 }
0x1cb6   :  { %v1408_v48 = vpop.f32.mrb[12].mxu0 }
0x1cb7   :  { %v1413_v49 = vrot.slane %v1408_v48, 6  ;;  %v3302_v50 = vpop.f32.mrb[13].mxu0 }
0x1cb9   :  { %v1415_v13 = vadd.f32 %v1413_v49, %v4274_v10 }
0x1cbb   :  { %3707 = vtanh.f32 %v1415_v13  ;;  %v3006_v53 = vmul.f32 -1.442695, %v1415_v13 }
0x1cbd   :  { %3709 = vpow2.f32 %v3006_v53 }
0x1cc5   :  { %v3708_v52 = vpop.eup %3707 }
0x1cc6   :  { %1428 = vrot.lane.b32.xlu0 %v3708_v52, %s3970_s12 }
0x1cc7   :  { %v3710_v54 = vpop.eup %3709 }
0x1cc8   :  { %v1419_v55 = vadd.f32 1.0, %v3710_v54 }
0x1cca   :  { %3711 = vrcp.f32 %v1419_v55 }
0x1cd4   :  { %v3712_v56 = vpop.eup %3711 }
0x1cd5   :  { %v1426_v61 = vmul.f32 %v3712_v56, %v1424_v60 }
0x1d38   :  { %v1429_v57 = vpop.permute.xlu0 %1428 }
0x1d39   :  { %v1431_v59 = vmul.f32 %v3712_v56, %v1429_v57 }
0x1d3b   :  { %1433 = vrot.lane.b32.xlu1 %v1431_v59, %s3971_s3 }
0x1dad   :  { %v1434_v62 = vpop.permute.xlu1 %1433 }
0x1dae   :  { %v1436_v63 = vadd.f32 %v1434_v62, %v1426_v61 }
0x1db0   :  { %3713 = vtanh.f32 %v1436_v63  ;;  %v1531_v24 = vrot.slane %v1436_v63, 7 }
0x1dba   :  { %v3714_v3 = vpop.eup %3713 }
0x1dbb   :  { %1439 = vrot.lane.b32.xlu0 %v3714_v3, %s3970_s12 }
0x1e2d   :  { %v1440_v9 = vpop.permute.xlu0 %1439 }
0x1e2e   :  { %v1442_v4 = vmul.f32 %v3712_v56, %v1440_v9 }
0x1e30   :  { %v1444_v7 = vrot.slane %v1442_v4, 2  ;;  %v1979_v8 = vsel %vm1034_vm5, %v1978_v6, %v1442_v4 }
0x1e32   :  { %1445 = vrot.lane.b32.xlu1 %v1444_v7, %s3971_s3 }
0x1ea4   :  { %v1446_v11 = vpop.permute.xlu1 %1445 }
0x1ea5   :  { %3312 = vmatmul.mubr.msk.f32.vlgmr.msra.gmra.mrb[12].mxu1 %vm185_vm3, %v1446_v11 }
0x1ea6   :  { %3543 = vmatpush3.bf16.msra.mxu1 %v4241_v58  ;;  %3333 = vmatprep.mubr.msk.f32.mxu1 %vm3969_vm0, %v3968_v1 }
0x1ea7   :  { %3544 = vmatprep.subr.bf16.mxu1 %v3967_v0 }
0x1eaa   :  { %3546 = vmatpush3.bf16.msra.mxu1 %v4245_v5 }
0x1eab   :  { %3553 = vmatprep.subr.bf16.mxu1 %v3967_v0 }
0x1f78   :  { %v1515_v12 = vpop.f32.mrb[12].mxu1 }
0x1f79   :  { %v1520_v14 = vrot.slane %v1515_v12, 5  ;;  %v3313_v15 = vpop.f32.mrb[13].mxu1 }
0x1f7b   :  { %v1522_v16 = vadd.f32 %v1520_v14, %v4274_v10 }
0x1f7d   :  { %3715 = vtanh.f32 %v1522_v16  ;;  %v3008_v18 = vmul.f32 -1.442695, %v1522_v16 }
0x1f7f   :  { %3717 = vpow2.f32 %v3008_v18 }
0x1f87   :  { %v3716_v17 = vpop.eup %3715 }
0x1f88   :  { %1535 = vrot.lane.b32.xlu0 %v3716_v17, %s3970_s12 }
0x1f89   :  { %v3718_v19 = vpop.eup %3717 }
0x1f8a   :  { %v1526_v20 = vadd.f32 1.0, %v3718_v19 }
0x1f8c   :  { %3719 = vrcp.f32 %v1526_v20 }
0x1f96   :  { %v3720_v21 = vpop.eup %3719 }
0x1f97   :  { %v1533_v25 = vmul.f32 %v3720_v21, %v1531_v24 }
0x1ffa   :  { %v1536_v22 = vpop.permute.xlu0 %1535 }
0x1ffb   :  { %v1538_v23 = vmul.f32 %v3720_v21, %v1536_v22 }
0x1ffd   :  { %1540 = vrot.lane.b32.xlu1 %v1538_v23, %s3971_s3 }
0x206f   :  { %v1541_v26 = vpop.permute.xlu1 %1540 }
0x2070   :  { %v1543_v27 = vadd.f32 %v1541_v26, %v1533_v25 }
0x2072   :  { %3721 = vtanh.f32 %v1543_v27  ;;  %v1638_v45 = vrot.slane %v1543_v27, 7 }
0x207c   :  { %v3722_v28 = vpop.eup %3721 }
0x207d   :  { %1546 = vrot.lane.b32.xlu0 %v3722_v28, %s3970_s12 }
0x20ef   :  { %v1547_v29 = vpop.permute.xlu0 %1546 }
0x20f0   :  { %v1549_v30 = vmul.f32 %v3720_v21, %v1547_v29 }
0x20f2   :  { %v1551_v31 = vrot.slane %v1549_v30, 3  ;;  %v1980_v32 = vsel %vm1036_vm6, %v1979_v8, %v1549_v30 }
0x20f4   :  { %1552 = vrot.lane.b32.xlu1 %v1551_v31, %s3971_s3 }
0x2166   :  { %v1553_v33 = vpop.permute.xlu1 %1552 }
0x2167   :  { %3323 = vmatmul.mubr.msk.f32.vlgmr.msra.gmra.mrb[14].mxu0 %vm185_vm3, %v1553_v33 }
0x2168   :  { %3549 = vmatpush3.bf16.msra.mxu0 %v4241_v58  ;;  %3344 = vmatprep.mubr.msk.f32.mxu0 %vm3969_vm0, %v3968_v1 }
0x2169   :  { %3550 = vmatprep.subr.bf16.mxu0 %v3967_v0 }
0x216c   :  { %3552 = vmatpush3.bf16.msra.mxu0 %v4245_v5 }
0x216d   :  { %3559 = vmatprep.subr.bf16.mxu0 %v3967_v0 }
0x223a   :  { %v1622_v34 = vpop.f32.mrb[14].mxu0 }
0x223b   :  { %v1627_v35 = vrot.slane %v1622_v34, 4  ;;  %v3324_v36 = vpop.f32.mrb[15].mxu0 }
0x223d   :  { %v1629_v37 = vadd.f32 %v1627_v35, %v4274_v10 }
0x223f   :  { %3723 = vtanh.f32 %v1629_v37  ;;  %v3010_v39 = vmul.f32 -1.442695, %v1629_v37 }
0x2241   :  { %3725 = vpow2.f32 %v3010_v39 }
0x2249   :  { %v3724_v38 = vpop.eup %3723 }
0x224a   :  { %1642 = vrot.lane.b32.xlu0 %v3724_v38, %s3970_s12 }
0x224b   :  { %v3726_v40 = vpop.eup %3725 }
0x224c   :  { %v1633_v41 = vadd.f32 1.0, %v3726_v40 }
0x224e   :  { %3727 = vrcp.f32 %v1633_v41 }
0x2258   :  { %v3728_v42 = vpop.eup %3727 }
0x2259   :  { %v1640_v46 = vmul.f32 %v3728_v42, %v1638_v45 }
0x22bc   :  { %v1643_v43 = vpop.permute.xlu0 %1642 }
0x22bd   :  { %v1645_v44 = vmul.f32 %v3728_v42, %v1643_v43 }
0x22bf   :  { %1647 = vrot.lane.b32.xlu1 %v1645_v44, %s3971_s3 }
0x2331   :  { %v1648_v47 = vpop.permute.xlu1 %1647 }
0x2332   :  { %v1650_v48 = vadd.f32 %v1648_v47, %v1640_v46 }
0x2334   :  { %3729 = vtanh.f32 %v1650_v48 }
0x233e   :  { %v3730_v49 = vpop.eup %3729 }
0x233f   :  { %1653 = vrot.lane.b32.xlu0 %v3730_v49, %s3970_s12 }
0x23b1   :  { %v1654_v50 = vpop.permute.xlu0 %1653 }
0x23b2   :  { %v1656_v13 = vmul.f32 %v3728_v42, %v1654_v50 }
0x23b4   :  { %v1658_v52 = vrot.slane %v1656_v13, 4  ;;  %v1981_v53 = vsel %vm107_vm1, %v1980_v32, %v1656_v13 }
0x23b6   :  { %1659 = vrot.lane.b32.xlu1 %v1658_v52, %s3971_s3 }
0x2428   :  { %v1660_v54 = vpop.permute.xlu1 %1659 }
0x2429   :  { %3334 = vmatmul.mubr.msk.f32.vlgmr.msra.gmra.mrb[14].mxu1 %vm185_vm3, %v1660_v54  ;;  %v1985_v54 = vld [vmem:[%s4529_s7] sm:$0xff] }
0x242a   :  { %3555 = vmatpush3.bf16.msra.mxu1 %v4241_v58  ;;  %3355 = vmatprep.mubr.msk.f32.mxu1 %vm3969_vm0, %v3968_v1 }
0x242b   :  { %3556 = vmatprep.subr.bf16.mxu1 %v3967_v0 }
0x242e   :  { %3558 = vmatpush3.bf16.msra.mxu1 %v4245_v5  ;;  %v1745_v5 = vrot.slane %v1650_v48, 7 }
0x242f   :  { %3565 = vmatprep.subr.bf16.mxu1 %v3967_v0 }
0x24fc   :  { %v1729_v55 = vpop.f32.mrb[14].mxu1 }
0x24fd   :  { %v1734_v56 = vrot.slane %v1729_v55, 3  ;;  %v3335_v57 = vpop.f32.mrb[15].mxu1  ;;  %v1986_v55 = vld [vmem:[%s4529_s7 + $0x8] sm:$0xff] }
0x24fe   :  { %v3560_v57 = vpack.c.bf16 %v1986_v55, %v1985_v54 }
0x24ff   :  { %v1736_v59 = vadd.f32 %v1734_v56, %v4274_v10  ;;  %v2071_v56 = vld [vmem:[#allocation8] sm:$0xff] }
0x2501   :  { %3731 = vtanh.f32 %v1736_v59  ;;  %v3012_v61 = vmul.f32 -1.442695, %v1736_v59  ;;  %v2072_v59 = vld [vmem:[#allocation8 + $0x8] sm:$0xff] }
0x2503   :  { %3733 = vpow2.f32 %v3012_v61 }
0x250b   :  { %v3732_v60 = vpop.eup %3731 }
0x250c   :  { %1749 = vrot.lane.b32.xlu0 %v3732_v60, %s3970_s12  ;;  %v1987_v60 = vld [vmem:[%s4529_s7 + $0x10] sm:$0xff] }
0x250d   :  { %v3734_v58 = vpop.eup %3733 }
0x250e   :  { %v1740_v62 = vadd.f32 1.0, %v3734_v58  ;;  %v4381_v58 = vpack.c.bf16 %v2072_v59, %v2071_v56 }
0x2510   :  { %3735 = vrcp.f32 %v1740_v62  ;;  %v2073_v62 = vld [vmem:[#allocation8 + $0x10] sm:$0xff] }
0x251a   :  { %v3736_v63 = vpop.eup %3735 }
0x251b   :  { %v1747_v4 = vmul.f32 %v3736_v63, %v1745_v5 }
0x257e   :  { %v1750_v3 = vpop.permute.xlu0 %1749 }
0x257f   :  { %v1752_v9 = vmul.f32 %v3736_v63, %v1750_v3 }
0x2581   :  { %1754 = vrot.lane.b32.xlu1 %v1752_v9, %s3971_s3 }
0x25f3   :  { %v1755_v6 = vpop.permute.xlu1 %1754 }
0x25f4   :  { %v1757_v7 = vadd.f32 %v1755_v6, %v1747_v4 }
0x25f6   :  { %3737 = vtanh.f32 %v1757_v7  ;;  %v1852_v28 = vrot.slane %v1757_v7, 7  ;;  %v2919_v7 = vrot.slane %v4259_v2, 7 }
0x2600   :  { %v3738_v8 = vpop.eup %3737 }
0x2601   :  { %1760 = vrot.lane.b32.xlu0 %v3738_v8, %s3970_s12 }
0x2673   :  { %v1761_v11 = vpop.permute.xlu0 %1760 }
0x2674   :  { %v1763_v12 = vmul.f32 %v3736_v63, %v1761_v11  ;;  %v2074_v63 = vld [vmem:[#allocation8 + $0x18] sm:$0xff] }
0x2675   :  { %v4385_v9 = vpack.c.bf16 %v2074_v63, %v2073_v62 }
0x2676   :  { %v1765_v14 = vrot.slane %v1763_v12, 5  ;;  %v1982_v15 = vsel %vm1039_vm7, %v1981_v53, %v1763_v12 }
0x2678   :  { %1766 = vrot.lane.b32.xlu1 %v1765_v14, %s3971_s3 }
0x26ea   :  { %v1767_v16 = vpop.permute.xlu1 %1766 }
0x26eb   :  { %3345 = vmatmul.mubr.msk.f32.vlgmr.msra.gmra.mrb[16].mxu0 %vm185_vm3, %v1767_v16  ;;  %v3017_v16 = vld [vmem:[%s4531_s9] ss:$0 sm:$0xff]  ;;  %s3972_s9 = smov 96  }
0x26ec   :  { %3366 = vmatprep.mubr.msk.f32.mxu0 %vm3969_vm0, %v3968_v1  ;;  %3561 = vmatpush3.bf16.msra.mxu0 %v3560_v57 }
0x26ed   :  { %3562 = vmatprep.subr.bf16.mxu0 %v3967_v0 }
0x27be   :  { %v1836_v17 = vpop.f32.mrb[16].mxu0 }
0x27bf   :  { %v1841_v18 = vrot.slane %v1836_v17, 2  ;;  %v3346_v19 = vpop.f32.mrb[17].mxu0 }
0x27c1   :  { %v1843_v20 = vadd.f32 %v1841_v18, %v4274_v10 }
0x27c3   :  { %3739 = vtanh.f32 %v1843_v20  ;;  %v3014_v22 = vmul.f32 -1.442695, %v1843_v20 }
0x27c5   :  { %3741 = vpow2.f32 %v3014_v22 }
0x27cd   :  { %v3740_v21 = vpop.eup %3739 }
0x27ce   :  { %1856 = vrot.lane.b32.xlu0 %v3740_v21, %s3970_s12 }
0x27cf   :  { %v3742_v23 = vpop.eup %3741 }
0x27d0   :  { %v1847_v24 = vadd.f32 1.0, %v3742_v23 }
0x27d2   :  { %3743 = vrcp.f32 %v1847_v24 }
0x27dc   :  { %v3744_v25 = vpop.eup %3743 }
0x27dd   :  { %v1854_v29 = vmul.f32 %v3744_v25, %v1852_v28 }
0x2840   :  { %v1857_v26 = vpop.permute.xlu0 %1856 }
0x2841   :  { %v1859_v27 = vmul.f32 %v3744_v25, %v1857_v26 }
0x2843   :  { %1861 = vrot.lane.b32.xlu1 %v1859_v27, %s3971_s3 }
0x28b5   :  { %v1862_v30 = vpop.permute.xlu1 %1861 }
0x28b6   :  { %v1864_v31 = vadd.f32 %v1862_v30, %v1854_v29 }
0x28b8   :  { %3745 = vtanh.f32 %v1864_v31  ;;  %v1959_v49 = vrot.slane %v1864_v31, 7 }
0x28c2   :  { %v3746_v32 = vpop.eup %3745 }
0x28c3   :  { %1867 = vrot.lane.b32.xlu0 %v3746_v32, %s3970_s12 }
0x2935   :  { %v1868_v33 = vpop.permute.xlu0 %1867 }
0x2936   :  { %v1870_v34 = vmul.f32 %v3744_v25, %v1868_v33 }
0x2938   :  { %v1872_v35 = vrot.slane %v1870_v34, 6  ;;  %v1983_v36 = vsel %vm1041_vm8, %v1982_v15, %v1870_v34 }
0x293a   :  { %1873 = vrot.lane.b32.xlu1 %v1872_v35, %s3971_s3 }
0x29ac   :  { %v1874_v37 = vpop.permute.xlu1 %1873 }
0x29ad   :  { %3356 = vmatmul.mubr.msk.f32.vlgmr.msra.gmra.mrb[16].mxu1 %vm185_vm3, %v1874_v37 }
0x29ae   :  { %3377 = vmatprep.mubr.msk.f32.mxu1 %vm3969_vm0, %v3968_v1  ;;  %3567 = vmatpush3.bf16.msra.mxu1 %v4381_v58 }
0x29af   :  { %3568 = vmatprep.subr.bf16.mxu1 %v3967_v0 }
0x29b2   :  { %3570 = vmatpush3.bf16.msra.mxu1 %v4385_v9 }
0x29b3   :  { %3577 = vmatprep.subr.bf16.mxu1 %v3967_v0 }
0x29b5   :  { %3378 = vmatmul.mubr.f32.vlgmr.msra.gmra.mrb[18].mxu1 %v3968_v1 }
0x29b6   :  { %3579 = vmatpush3.bf16.msra.mxu1 %v4381_v58  ;;  %3399 = vmatprep.mubr.msk.f32.mxu1 %vm3969_vm0, %v3968_v1 }
0x29b7   :  { %3580 = vmatprep.subr.bf16.mxu1 %v3967_v0 }
0x29ba   :  { %3582 = vmatpush3.bf16.msra.mxu1 %v4385_v9 }
0x29bb   :  { %3589 = vmatprep.subr.bf16.mxu1 %v3967_v0 }
0x2a80   :  { %v1943_v38 = vpop.f32.mrb[16].mxu1 }
0x2a81   :  { %v1948_v39 = vrot.slane %v1943_v38, 1  ;;  %v3357_v40 = vpop.f32.mrb[17].mxu1 }
0x2a83   :  { %v1950_v41 = vadd.f32 %v1948_v39, %v4274_v10  ;;  %v2936_v10 = vrot.slane %v4238_v51, 7  ;;  %v1988_v51 = vld [vmem:[%s4529_s7 + $0x18] sm:$0xff] }
0x2a84   :  { %v3563_v3 = vpack.c.bf16 %v1988_v51, %v1987_v60 }
0x2a85   :  { %3747 = vtanh.f32 %v1950_v41  ;;  %v3016_v43 = vmul.f32 -1.442695, %v1950_v41 }
0x2a86   :  { %3564 = vmatpush3.bf16.msra.mxu0 %v3563_v3 }
0x2a87   :  { %3749 = vpow2.f32 %v3016_v43  ;;  %3571 = vmatprep.subr.bf16.mxu0 %v3967_v0 }
0x2a88   :  { %v2141_v2 = vpop.f32.mrb[18].mxu1 }
0x2a89   :  { %v3379_v15 = vpop.f32.mrb[19].mxu1 }
0x2a8f   :  { %v3748_v42 = vpop.eup %3747 }
0x2a90   :  { %1963 = vrot.lane.b32.xlu0 %v3748_v42, %s3970_s12 }
0x2a91   :  { %v3750_v44 = vpop.eup %3749 }
0x2a92   :  { %v1954_v45 = vadd.f32 1.0, %v3750_v44 }
0x2a94   :  { %3751 = vrcp.f32 %v1954_v45 }
0x2a9e   :  { %v3752_v46 = vpop.eup %3751 }
0x2a9f   :  { %v1961_v50 = vmul.f32 %v3752_v46, %v1959_v49 }
0x2b02   :  { %v1964_v47 = vpop.permute.xlu0 %1963 }
0x2b03   :  { %v1966_v48 = vmul.f32 %v3752_v46, %v1964_v47 }
0x2b05   :  { %1968 = vrot.lane.b32.xlu1 %v1966_v48, %s3971_s3 }
0x2b77   :  { %v1969_v13 = vpop.permute.xlu1 %1968 }
0x2b78   :  { %v1971_v52 = vadd.f32 %v1969_v13, %v1961_v50 }
0x2b7a   :  { %3753 = vtanh.f32 %v1971_v52  ;;  %v2939_v53 = vrot.slane %v1971_v52, 6 }
0x2b7c   :  { %v4379_v61 = vsel %vm1032_vm4, %v2936_v10, %v2939_v53 }
0x2b84   :  { %v3754_v5 = vpop.eup %3753 }
0x2b85   :  { %1974 = vrot.lane.b32.xlu0 %v3754_v5, %s3970_s12 }
0x2bf7   :  { %v1975_v4 = vpop.permute.xlu0 %1974 }
0x2bf8   :  { %v1977_v6 = vmul.f32 %v3752_v46, %v1975_v4 }
0x2bfa   :  { %v2922_v8 = vrot.slane %v1977_v6, 6  ;;  %v1984_v11 = vsel %vm1043_vm9, %v1983_v36, %v1977_v6 }
0x2bfb   :  { %1997 = vrot.lane.b32.xlu1 %v1984_v11, %s3971_s3 }
0x2bfc   :  { %v4403_v12 = vsel %vm1032_vm4, %v2919_v7, %v2922_v8 }
0x2c6d   :  { %v1998_v14 = vpop.permute.xlu1 %1997 }
0x2c6e   :  { %3367 = vmatmul.mubr.msk.f32.vlgmr.msra.gmra.mrb[18].mxu0 %vm185_vm3, %v1998_v14 }
0x2c6f   :  { %3573 = vmatpush3.bf16.msra.mxu0 %v4381_v58  ;;  %3388 = vmatprep.mubr.msk.f32.mxu0 %vm3969_vm0, %v3968_v1 }
0x2c70   :  { %3574 = vmatprep.subr.bf16.mxu0 %v3967_v0 }
0x2c73   :  { %3576 = vmatpush3.bf16.msra.mxu0 %v4385_v9 }
0x2c74   :  { %3583 = vmatprep.subr.bf16.mxu0 %v3967_v0 }
0x2d41   :  { %v2067_v17 = vpop.f32.mrb[18].mxu0 }
0x2d42   :  { %v4415_v18 = vadd.f32 %v3017_v16, %v2067_v17  ;;  %v3368_v19 = vpop.f32.mrb[19].mxu0 }
0x2d44   :  { %v2145_v20 = vadd.f32 %v2141_v2, %v4415_v18 }
0x2d46   :  { %3755 = vtanh.f32 %v2145_v20  ;;  %v3019_v22 = vmul.f32 -1.442695, %v2145_v20 }
0x2d48   :  { %3757 = vpow2.f32 %v3019_v22 }
0x2d50   :  { %v3756_v21 = vpop.eup %3755 }
0x2d51   :  { %2155 = vrot.lane.b32.xlu0 %v3756_v21, %s3970_s12 }
0x2d52   :  { %v3758_v23 = vpop.eup %3757 }
0x2d53   :  { %v2149_v24 = vadd.f32 1.0, %v3758_v23 }
0x2d55   :  { %3759 = vrcp.f32 %v2149_v24 }
0x2d5f   :  { %v3760_v25 = vpop.eup %3759 }
0x2d60   :  { %v2153_v28 = vmul.f32 0.0, %v3760_v25 }
0x2dc3   :  { %v2156_v26 = vpop.permute.xlu0 %2155 }
0x2dc4   :  { %v2158_v27 = vmul.f32 %v3760_v25, %v2156_v26 }
0x2dc6   :  { %2160 = vrot.lane.b32.xlu1 %v2158_v27, %s3971_s3 }
0x2e38   :  { %v2161_v29 = vpop.permute.xlu1 %2160 }
0x2e39   :  { %v2163_v30 = vadd.f32 %v2161_v29, %v2153_v28 }
0x2e3b   :  { %3761 = vtanh.f32 %v2163_v30  ;;  %v2257_v46 = vrot.slane %v2163_v30, 7 }
0x2e45   :  { %v3762_v31 = vpop.eup %3761 }
0x2e46   :  { %2166 = vrot.lane.b32.xlu0 %v3762_v31, %s3970_s12 }
0x2eb8   :  { %v2167_v32 = vpop.permute.xlu0 %2166 }
0x2eb9   :  { %v2169_v33 = vmul.f32 %v3760_v25, %v2167_v32 }
0x2ebb   :  { %2171 = vrot.lane.b32.xlu1 %v2169_v33, %s3971_s3 }
0x2f2d   :  { %v2172_v34 = vpop.permute.xlu1 %2171 }
0x2f2e   :  { %3389 = vmatmul.mubr.msk.f32.vlgmr.msra.gmra.mrb[20].mxu0 %vm185_vm3, %v2172_v34 }
0x2f2f   :  { %3585 = vmatpush3.bf16.msra.mxu0 %v4381_v58  ;;  %3410 = vmatprep.mubr.msk.f32.mxu0 %vm3969_vm0, %v3968_v1 }
0x2f30   :  { %3586 = vmatprep.subr.bf16.mxu0 %v3967_v0 }
0x2f33   :  { %3588 = vmatpush3.bf16.msra.mxu0 %v4385_v9 }
0x2f34   :  { %3595 = vmatprep.subr.bf16.mxu0 %v3967_v0 }
0x3001   :  { %v2241_v35 = vpop.f32.mrb[20].mxu0 }
0x3002   :  { %v2246_v36 = vrot.slane %v2241_v35, 7  ;;  %v3390_v37 = vpop.f32.mrb[21].mxu0 }
0x3004   :  { %v2248_v38 = vadd.f32 %v2246_v36, %v4415_v18 }
0x3006   :  { %3763 = vtanh.f32 %v2248_v38  ;;  %v3021_v40 = vmul.f32 -1.442695, %v2248_v38 }
0x3008   :  { %3765 = vpow2.f32 %v3021_v40 }
0x3010   :  { %v3764_v39 = vpop.eup %3763 }
0x3011   :  { %2261 = vrot.lane.b32.xlu0 %v3764_v39, %s3970_s12 }
0x3012   :  { %v3766_v41 = vpop.eup %3765 }
0x3013   :  { %v2252_v42 = vadd.f32 1.0, %v3766_v41 }
0x3015   :  { %3767 = vrcp.f32 %v2252_v42 }
0x301f   :  { %v3768_v43 = vpop.eup %3767 }
0x3020   :  { %v2259_v47 = vmul.f32 %v3768_v43, %v2257_v46 }
0x3083   :  { %v2262_v44 = vpop.permute.xlu0 %2261 }
0x3084   :  { %v2264_v45 = vmul.f32 %v3768_v43, %v2262_v44 }
0x3086   :  { %2266 = vrot.lane.b32.xlu1 %v2264_v45, %s3971_s3 }
0x30f8   :  { %v2267_v48 = vpop.permute.xlu1 %2266 }
0x30f9   :  { %v2269_v49 = vadd.f32 %v2267_v48, %v2259_v47 }
0x30fb   :  { %3769 = vtanh.f32 %v2269_v49  ;;  %v2364_v4 = vrot.slane %v2269_v49, 7 }
0x3105   :  { %v3770_v50 = vpop.eup %3769 }
0x3106   :  { %2272 = vrot.lane.b32.xlu0 %v3770_v50, %s3970_s12 }
0x3178   :  { %v2273_v13 = vpop.permute.xlu0 %2272 }
0x3179   :  { %v2275_v52 = vmul.f32 %v3768_v43, %v2273_v13 }
0x317b   :  { %v2277_v10 = vrot.slane %v2275_v52, 1 }
0x317d   :  { %2278 = vrot.lane.b32.xlu1 %v2277_v10, %s3971_s3 }
0x31ef   :  { %v2279_v53 = vpop.permute.xlu1 %2278 }
0x31f0   :  { %3400 = vmatmul.mubr.msk.f32.vlgmr.msra.gmra.mrb[20].mxu1 %vm185_vm3, %v2279_v53 }
0x31f1   :  { %3591 = vmatpush3.bf16.msra.mxu1 %v4381_v58  ;;  %3421 = vmatprep.mubr.msk.f32.mxu1 %vm3969_vm0, %v3968_v1 }
0x31f2   :  { %3592 = vmatprep.subr.bf16.mxu1 %v3967_v0 }
0x31f5   :  { %3594 = vmatpush3.bf16.msra.mxu1 %v4385_v9 }
0x31f6   :  { %3601 = vmatprep.subr.bf16.mxu1 %v3967_v0 }
0x32c3   :  { %v2348_v54 = vpop.f32.mrb[20].mxu1 }
0x32c4   :  { %v2353_v55 = vrot.slane %v2348_v54, 6  ;;  %v3401_v56 = vpop.f32.mrb[21].mxu1 }
0x32c6   :  { %v2355_v57 = vadd.f32 %v2353_v55, %v4415_v18 }
0x32c8   :  { %3771 = vtanh.f32 %v2355_v57  ;;  %v3023_v60 = vmul.f32 -1.442695, %v2355_v57 }
0x32ca   :  { %3773 = vpow2.f32 %v3023_v60 }
0x32d2   :  { %v3772_v59 = vpop.eup %3771 }
0x32d3   :  { %2368 = vrot.lane.b32.xlu0 %v3772_v59, %s3970_s12 }
0x32d4   :  { %v3774_v51 = vpop.eup %3773 }
0x32d5   :  { %v2359_v62 = vadd.f32 1.0, %v3774_v51 }
0x32d7   :  { %3775 = vrcp.f32 %v2359_v62 }
0x32e1   :  { %v3776_v63 = vpop.eup %3775 }
0x32e2   :  { %v2366_v6 = vmul.f32 %v3776_v63, %v2364_v4 }
0x3345   :  { %v2369_v3 = vpop.permute.xlu0 %2368 }
0x3346   :  { %v2371_v5 = vmul.f32 %v3776_v63, %v2369_v3 }
0x3348   :  { %2373 = vrot.lane.b32.xlu1 %v2371_v5, %s3971_s3 }
0x33ba   :  { %v2374_v7 = vpop.permute.xlu1 %2373 }
0x33bb   :  { %v2376_v8 = vadd.f32 %v2374_v7, %v2366_v6 }
0x33bd   :  { %3777 = vtanh.f32 %v2376_v8  ;;  %v2471_v29 = vrot.slane %v2376_v8, 7 }
0x33c7   :  { %v3778_v11 = vpop.eup %3777 }
0x33c8   :  { %2379 = vrot.lane.b32.xlu0 %v3778_v11, %s3970_s12 }
0x343a   :  { %v2380_v14 = vpop.permute.xlu0 %2379 }
0x343b   :  { %v2382_v2 = vmul.f32 %v3776_v63, %v2380_v14 }
0x343d   :  { %v2384_v15 = vrot.slane %v2382_v2, 2 }
0x343f   :  { %2385 = vrot.lane.b32.xlu1 %v2384_v15, %s3971_s3 }
0x34b1   :  { %v2386_v16 = vpop.permute.xlu1 %2385 }
0x34b2   :  { %3411 = vmatmul.mubr.msk.f32.vlgmr.msra.gmra.mrb[22].mxu0 %vm185_vm3, %v2386_v16 }
0x34b3   :  { %3597 = vmatpush3.bf16.msra.mxu0 %v4381_v58  ;;  %3432 = vmatprep.mubr.msk.f32.mxu0 %vm3969_vm0, %v3968_v1 }
0x34b4   :  { %3598 = vmatprep.subr.bf16.mxu0 %v3967_v0 }
0x34b7   :  { %3600 = vmatpush3.bf16.msra.mxu0 %v4385_v9 }
0x34b8   :  { %3607 = vmatprep.subr.bf16.mxu0 %v3967_v0 }
0x3585   :  { %v2455_v17 = vpop.f32.mrb[22].mxu0 }
0x3586   :  { %v2460_v19 = vrot.slane %v2455_v17, 5  ;;  %v3412_v20 = vpop.f32.mrb[23].mxu0 }
0x3588   :  { %v2462_v21 = vadd.f32 %v2460_v19, %v4415_v18 }
0x358a   :  { %3779 = vtanh.f32 %v2462_v21  ;;  %v3025_v23 = vmul.f32 -1.442695, %v2462_v21 }
0x358c   :  { %3781 = vpow2.f32 %v3025_v23 }
0x3594   :  { %v3780_v22 = vpop.eup %3779 }
0x3595   :  { %2475 = vrot.lane.b32.xlu0 %v3780_v22, %s3970_s12 }
0x3596   :  { %v3782_v24 = vpop.eup %3781 }
0x3597   :  { %v2466_v25 = vadd.f32 1.0, %v3782_v24 }
0x3599   :  { %3783 = vrcp.f32 %v2466_v25 }
0x35a3   :  { %v3784_v26 = vpop.eup %3783 }
0x35a4   :  { %v2473_v30 = vmul.f32 %v3784_v26, %v2471_v29 }
0x3607   :  { %v2476_v27 = vpop.permute.xlu0 %2475 }
0x3608   :  { %v2478_v28 = vmul.f32 %v3784_v26, %v2476_v27 }
0x360a   :  { %2480 = vrot.lane.b32.xlu1 %v2478_v28, %s3971_s3 }
0x367c   :  { %v2481_v31 = vpop.permute.xlu1 %2480 }
0x367d   :  { %v2483_v32 = vadd.f32 %v2481_v31, %v2473_v30 }
0x367f   :  { %3785 = vtanh.f32 %v2483_v32  ;;  %v2578_v49 = vrot.slane %v2483_v32, 7 }
0x3689   :  { %v3786_v33 = vpop.eup %3785 }
0x368a   :  { %2486 = vrot.lane.b32.xlu0 %v3786_v33, %s3970_s12 }
0x36fc   :  { %v2487_v34 = vpop.permute.xlu0 %2486 }
0x36fd   :  { %v2489_v35 = vmul.f32 %v3784_v26, %v2487_v34 }
0x36ff   :  { %v2491_v36 = vrot.slane %v2489_v35, 3 }
0x3701   :  { %2492 = vrot.lane.b32.xlu1 %v2491_v36, %s3971_s3 }
0x3773   :  { %v2493_v37 = vpop.permute.xlu1 %2492 }
0x3774   :  { %3422 = vmatmul.mubr.msk.f32.vlgmr.msra.gmra.mrb[22].mxu1 %vm185_vm3, %v2493_v37 }
0x3775   :  { %3603 = vmatpush3.bf16.msra.mxu1 %v4381_v58  ;;  %3443 = vmatprep.mubr.msk.f32.mxu1 %vm3969_vm0, %v3968_v1 }
0x3776   :  { %3604 = vmatprep.subr.bf16.mxu1 %v3967_v0 }
0x3779   :  { %3606 = vmatpush3.bf16.msra.mxu1 %v4385_v9 }
0x3847   :  { %v2562_v38 = vpop.f32.mrb[22].mxu1 }
0x3848   :  { %v2567_v39 = vrot.slane %v2562_v38, 4  ;;  %v3423_v40 = vpop.f32.mrb[23].mxu1 }
0x384a   :  { %v2569_v41 = vadd.f32 %v2567_v39, %v4415_v18 }
0x384c   :  { %3787 = vtanh.f32 %v2569_v41  ;;  %v3027_v43 = vmul.f32 -1.442695, %v2569_v41 }
0x384e   :  { %3789 = vpow2.f32 %v3027_v43 }
0x3856   :  { %v3788_v42 = vpop.eup %3787 }
0x3857   :  { %2582 = vrot.lane.b32.xlu0 %v3788_v42, %s3970_s12 }
0x3858   :  { %v3790_v44 = vpop.eup %3789 }
0x3859   :  { %v2573_v45 = vadd.f32 1.0, %v3790_v44 }
0x385b   :  { %3791 = vrcp.f32 %v2573_v45 }
0x3865   :  { %v3792_v46 = vpop.eup %3791 }
0x3866   :  { %v2580_v50 = vmul.f32 %v3792_v46, %v2578_v49 }
0x38c9   :  { %v2583_v47 = vpop.permute.xlu0 %2582 }
0x38ca   :  { %v2585_v48 = vmul.f32 %v3792_v46, %v2583_v47 }
0x38cc   :  { %2587 = vrot.lane.b32.xlu1 %v2585_v48, %s3971_s3 }
0x393e   :  { %v2588_v13 = vpop.permute.xlu1 %2587 }
0x393f   :  { %v2590_v52 = vadd.f32 %v2588_v13, %v2580_v50 }
0x3941   :  { %3793 = vtanh.f32 %v2590_v52 }
0x394b   :  { %v3794_v10 = vpop.eup %3793 }
0x394c   :  { %2593 = vrot.lane.b32.xlu0 %v3794_v10, %s3970_s12 }
0x39be   :  { %v2594_v53 = vpop.permute.xlu0 %2593 }
0x39bf   :  { %v2596_v54 = vmul.f32 %v3792_v46, %v2594_v53 }
0x39c1   :  { %v2598_v55 = vrot.slane %v2596_v54, 4 }
0x39c3   :  { %2599 = vrot.lane.b32.xlu1 %v2598_v55, %s3971_s3 }
0x3a35   :  { %v2600_v56 = vpop.permute.xlu1 %2599 }
0x3a36   :  { %3433 = vmatmul.mubr.msk.f32.vlgmr.msra.gmra.mrb[24].mxu0 %vm185_vm3, %v2600_v56 }
0x3a37   :  { %3609 = vmatpush3.bf16.msra.mxu0 %v4381_v58  ;;  %3454 = vmatprep.mubr.msk.f32.mxu0 %vm3969_vm0, %v3968_v1 }
0x3a38   :  { %3610 = vmatprep.subr.bf16.mxu0 %v3967_v0  ;;  %v2685_v0 = vrot.slane %v2590_v52, 7 }
0x3a3b   :  { %3612 = vmatpush3.bf16.msra.mxu0 %v4385_v9 }
0x3b09   :  { %v2669_v57 = vpop.f32.mrb[24].mxu0 }
0x3b0a   :  { %v2674_v59 = vrot.slane %v2669_v57, 3  ;;  %v3434_v60 = vpop.f32.mrb[25].mxu0 }
0x3b0c   :  { %v2676_v51 = vadd.f32 %v2674_v59, %v4415_v18 }
0x3b0e   :  { %3795 = vtanh.f32 %v2676_v51  ;;  %v3029_v63 = vmul.f32 -1.442695, %v2676_v51 }
0x3b10   :  { %3797 = vpow2.f32 %v3029_v63 }
0x3b18   :  { %v3796_v62 = vpop.eup %3795 }
0x3b19   :  { %2689 = vrot.lane.b32.xlu0 %v3796_v62, %s3970_s12 }
0x3b1a   :  { %v3798_v3 = vpop.eup %3797 }
0x3b1b   :  { %v2680_v58 = vadd.f32 1.0, %v3798_v3 }
0x3b1d   :  { %3799 = vrcp.f32 %v2680_v58 }
0x3b27   :  { %v3800_v5 = vpop.eup %3799 }
0x3b28   :  { %v2687_v9 = vmul.f32 %v3800_v5, %v2685_v0 }
0x3b8b   :  { %v2690_v1 = vpop.permute.xlu0 %2689 }
0x3b8c   :  { %v2692_v4 = vmul.f32 %v3800_v5, %v2690_v1 }
0x3b8e   :  { %2694 = vrot.lane.b32.xlu1 %v2692_v4, %s3971_s3 }
0x3c00   :  { %v2695_v6 = vpop.permute.xlu1 %2694 }
0x3c01   :  { %v2697_v7 = vadd.f32 %v2695_v6, %v2687_v9 }
0x3c03   :  { %3801 = vtanh.f32 %v2697_v7  ;;  %v2792_v28 = vrot.slane %v2697_v7, 7 }
0x3c0d   :  { %v3802_v8 = vpop.eup %3801 }
0x3c0e   :  { %2700 = vrot.lane.b32.xlu0 %v3802_v8, %s3970_s12 }
0x3c80   :  { %v2701_v11 = vpop.permute.xlu0 %2700 }
0x3c81   :  { %v2703_v14 = vmul.f32 %v3800_v5, %v2701_v11 }
0x3c83   :  { %v2705_v2 = vrot.slane %v2703_v14, 5 }
0x3c85   :  { %2706 = vrot.lane.b32.xlu1 %v2705_v2, %s3971_s3 }
0x3cf7   :  { %v2707_v15 = vpop.permute.xlu1 %2706 }
0x3cf8   :  { %3444 = vmatmul.mubr.msk.f32.vlgmr.msra.gmra.mrb[24].mxu1 %vm185_vm3, %v2707_v15 }
0x3dcb   :  { %v2776_v16 = vpop.f32.mrb[24].mxu1 }
0x3dcc   :  { %v2781_v17 = vrot.slane %v2776_v16, 2  ;;  %v3445_v19 = vpop.f32.mrb[25].mxu1 }
0x3dce   :  { %v2783_v20 = vadd.f32 %v2781_v17, %v4415_v18 }
0x3dd0   :  { %3803 = vtanh.f32 %v2783_v20  ;;  %v3031_v22 = vmul.f32 -1.442695, %v2783_v20 }
0x3dd2   :  { %3805 = vpow2.f32 %v3031_v22 }
0x3dda   :  { %v3804_v21 = vpop.eup %3803 }
0x3ddb   :  { %2796 = vrot.lane.b32.xlu0 %v3804_v21, %s3970_s12 }
0x3ddc   :  { %v3806_v23 = vpop.eup %3805 }
0x3ddd   :  { %v2787_v24 = vadd.f32 1.0, %v3806_v23 }
0x3ddf   :  { %3807 = vrcp.f32 %v2787_v24 }
0x3de9   :  { %v3808_v25 = vpop.eup %3807 }
0x3dea   :  { %v2794_v29 = vmul.f32 %v3808_v25, %v2792_v28 }
0x3e4d   :  { %v2797_v26 = vpop.permute.xlu0 %2796 }
0x3e4e   :  { %v2799_v27 = vmul.f32 %v3808_v25, %v2797_v26 }
0x3e50   :  { %2801 = vrot.lane.b32.xlu1 %v2799_v27, %s3971_s3 }
0x3ec2   :  { %v2802_v30 = vpop.permute.xlu1 %2801 }
0x3ec3   :  { %v2804_v31 = vadd.f32 %v2802_v30, %v2794_v29 }
0x3ec5   :  { %3809 = vtanh.f32 %v2804_v31  ;;  %v2899_v48 = vrot.slane %v2804_v31, 7 }
0x3ecf   :  { %v3810_v32 = vpop.eup %3809 }
0x3ed0   :  { %2807 = vrot.lane.b32.xlu0 %v3810_v32, %s3970_s12 }
0x3f42   :  { %v2808_v33 = vpop.permute.xlu0 %2807 }
0x3f43   :  { %v2810_v34 = vmul.f32 %v3808_v25, %v2808_v33 }
0x3f45   :  { %v2812_v35 = vrot.slane %v2810_v34, 6 }
0x3f47   :  { %2813 = vrot.lane.b32.xlu1 %v2812_v35, %s3971_s3 }
0x3fb9   :  { %v2814_v36 = vpop.permute.xlu1 %2813 }
0x3fba   :  { %3455 = vmatmul.mubr.msk.f32.vlgmr.msra.gmra.mrb[26].mxu0 %vm185_vm3, %v2814_v36 }
0x408d   :  { %v2883_v37 = vpop.f32.mrb[26].mxu0 }
0x408e   :  { %v2888_v38 = vrot.slane %v2883_v37, 1  ;;  %v3456_v39 = vpop.f32.mrb[27].mxu0 }
0x4090   :  { %v2890_v40 = vadd.f32 %v2888_v38, %v4415_v18 }
0x4092   :  { %3811 = vtanh.f32 %v2890_v40  ;;  %v3033_v42 = vmul.f32 -1.442695, %v2890_v40 }
0x4094   :  { %3813 = vpow2.f32 %v3033_v42 }
0x409c   :  { %v3812_v41 = vpop.eup %3811 }
0x409d   :  { %2903 = vrot.lane.b32.xlu0 %v3812_v41, %s3970_s12 }
0x409e   :  { %v3814_v43 = vpop.eup %3813 }
0x409f   :  { %v2894_v44 = vadd.f32 1.0, %v3814_v43 }
0x40a1   :  { %3815 = vrcp.f32 %v2894_v44 }
0x40ab   :  { %v3816_v45 = vpop.eup %3815 }
0x40ac   :  { %v2901_v49 = vmul.f32 %v3816_v45, %v2899_v48 }
0x410f   :  { %v2904_v46 = vpop.permute.xlu0 %2903 }
0x4110   :  { %v2906_v47 = vmul.f32 %v3816_v45, %v2904_v46 }
0x4112   :  { %2908 = vrot.lane.b32.xlu1 %v2906_v47, %s3971_s3 }
0x4184   :  { %v2909_v50 = vpop.permute.xlu1 %2908 }
0x4185   :  { %v2911_v13 = vadd.f32 %v2909_v50, %v2901_v49 }
0x4187   :  { %3817 = vtanh.f32 %v2911_v13  ;;  %v2942_v18 = vrot.slane %v2911_v13, 5 }
0x4189   :  { %v2945_v52 = vsel %vm1034_vm5, %v4379_v61, %v2942_v18 }
0x4191   :  { %v3818_v10 = vpop.eup %3817 }
0x4192   :  { %2914 = vrot.lane.b32.xlu0 %v3818_v10, %s3970_s12 }
0x4196   :  { %2947 = vrot.lane.b32.xlu0 %v2945_v52, %s3972_s9 }
0x4204   :  { %v2915_v53 = vpop.permute.xlu0 %2914 }
0x4205   :  { %v2917_v54 = vmul.f32 %v3816_v45, %v2915_v53 }
0x4207   :  { %v2925_v55 = vrot.slane %v2917_v54, 5 }
0x4208   :  { %v2948_v56 = vpop.permute.xlu0 %2947 }
0x4209   :  { %v2928_v57 = vsel %vm1034_vm5, %v4403_v12, %v2925_v55  ;;  %2950 = vst.msk [vmem:[#allocation11] sm:$0x7] %vm2933_vm10, %v2948_v56 }
0x420a   :  { %2930 = vrot.lane.b32.xlu1 %v2928_v57, %s3971_s3 }
0x420b   :  { %3918 = shalt.err (!%p3915_p8)
}
0x420c   :  { %s3919_s28 = scalar_lea.hbm %s4533_s11, 64 }
0x420d   :  { %p3920_p9 = scmp.ne.s32.totalorder %s4533_s11, %s3919_s28  ;;  %p3923_p10 = scmp.lt.u32.totalorder %s3919_s28, %s4533_s11 }
0x420f   :  { %p3925_p11 = pnand %p3923_p10, %p3920_p9 }
0x4211   :  { %3928 = shalt.err (!%p3925_p11)
}
0x4212   :  { %2970 = dma.vmem_to_hbm [thread:$0]  %s2968_s4, 64, %s4533_s11, [#allocation12]  }
0x4213   :  { %s3974_s0 = smov [#allocation10]  }
0x4214   :  { %s2957_s1 = sshll.u32 %s3974_s0, 4  ;;  %s2958_s1 = int_to_ptr.vmem [resolvable:$true] %s2957_s1 }
0x4215   :  { %s3929_s12 = scalar_lea.vmem %s2958_s1, 64  ;;  %p3934_p13 = scmp.lt.s32.totalorder %s2958_s1, %s2958_s1 }
0x4216   :  { %p3930_p12 = scmp.ne.s32.totalorder %s2958_s1, %s3929_s12  ;;  %p3935_p0 = scmp.lt.s32.totalorder %s3929_s12, %s3929_s12 }
0x4218   :  { %p3936_p1 = por %p3935_p0, %p3934_p13 }
0x421a   :  { %p3937_p2 = pnand %p3936_p1, %p3930_p12 }
0x427c   :  { %v2931_v61 = vpop.permute.xlu1 %2930 }
0x427d   :  { %2934 = vst.msk [vmem:[#allocation10] sm:$0x7] %vm2933_vm10, %v2931_v61 }
0x427e   :  { %3940 = shalt.err (!%p3937_p2)
}
0x427f   :  { %s3941_s14 = scalar_lea.hbm %s4532_s10, 64 }
0x4280   :  { %p3942_p3 = scmp.ne.s32.totalorder %s4532_s10, %s3941_s14  ;;  %p3945_p4 = scmp.lt.u32.totalorder %s3941_s14, %s4532_s10 }
0x4282   :  { %p3947_p5 = pnand %p3945_p4, %p3942_p3 }
0x4284   :  { %3950 = shalt.err (!%p3947_p5)
}
0x4285   :  { %2960 = dma.vmem_to_hbm [thread:$0]  %s2958_s1, 64, %s4532_s10, [#allocation4]  }
0x4286   :  { %3957 = dma.done.wait [#allocation4], 64  }
0x4287   :  { %3958 = vsyncadd [#allocation4], 4294967232 }
0x4288   :  { %3959 = dma.done.wait [#allocation12], 64  }
0x4289   :  { %3960 = vsyncadd [#allocation12], 4294967232 }
0x428a   :  { %2977 = vsyncpa [#allocation3], 1 }
0x428b   :  { %2978 = vsyncpa [#allocation6], 1 }
0x428c   :  { %2979 = vsyncpa [#allocation9], 1 }
0x428d   :  { %2980 = vsyncpa [#allocation4], 1 }
0x428e   :  { %2981 = vsyncpa [#allocation12], 1 }

</bundles_post_ra>
